<compile_context>
chip_gen: v7x
topology: tpu7x:2x2x1
jax: 0.10.0
libtpu: 0.0.40
codegen_flags: <defaults>
</compile_context>

<pallas_src>
import numpy as np
import jax
import jax.numpy as jnp
from jax.experimental import pallas as pl
from jax.experimental.pallas import tpu as pltpu

NUM_NODES = 32
RAW_MSG_DIM = 16
MEMORY_DIM = 32
TIME_DIM = 32
MSG_DIM = 2 * MEMORY_DIM + RAW_MSG_DIM + TIME_DIM  # IdentityMessage.out_channels = 112
K_PAD = 128     # padded GRU-input width  (>= MSG_DIM; one MXU K-pass even on v5e)
GATE_PAD = 128  # padded stacked-gate width (>= 3*MEMORY_DIM; lane-dense vregs)


# ----------------------------------------------------------------------------
# Fused Pallas kernel: gather + TimeEncoder + IdentityMessage + GRUCell + scatter
# ----------------------------------------------------------------------------
def _tgn_fused_kernel(mem_ref, idxcol_ref, nidrow_ref, fdata_ref, twb_ref,
                      wi_ref, wh_ref, b_ref, mem_out_ref, rows_ref, slab_ref):
    """Fused TGN memory update for one padded batch of nodes.

    mem_ref     : (num_nodes, H) f32   full node-memory table (aliased to output 0)
    idxcol_ref  : (3*n_pad, 1)  i32    [src ; dst ; n_id] stacked along sublanes;
                                       sentinel == num_nodes -> all-zero one-hot row
    nidrow_ref  : (1, n_pad)    i32    n_id along lanes (write-back one-hot)
    fdata_ref   : (n_pad, 2+R)  f32    [t_rel | has_msg | raw_msg]
    twb_ref     : (2, T)        f32    TimeEncoder [w ; b]
    wi_ref      : (K_PAD, GATE_PAD) bf16  W_i for slab [src|dst|raw|t_enc|0pad],
                                          gate order [r|z|n], zero-padded
    wh_ref      : (H, GATE_PAD)     bf16  W_h, gate order [r|z|n], zero-padded
    b_ref       : (1, 4H)       f32    [b_ir+b_hr | b_iz+b_hz | b_in | b_hn]
    mem_out_ref : (num_nodes, H) f32   updated memory table (aliases mem_ref's HBM)
    rows_ref    : (n_pad, H)    f32    updated memory rows of the selected nodes
    slab_ref    : (n_pad, K_PAD) f32   VMEM scratch: GRU-input slab
    """
    num_nodes, H = mem_ref.shape
    n_pad = rows_ref.shape[0]
    R = fdata_ref.shape[1] - 2
    T = twb_ref.shape[1]
    K_pad = slab_ref.shape[1]

    mem = mem_ref[...]

    # (1) ONE stacked one-hot gather: [mem_src ; mem_dst ; h] in a single MXU push.
    #     Kept f32 so the row-select is exact (hidden state + rank-update below).
    iota = jax.lax.broadcasted_iota(jnp.int32, (3 * n_pad, num_nodes), 1)
    oh_all = (idxcol_ref[...] == iota).astype(jnp.float32)
    g = jnp.dot(oh_all, mem, preferred_element_type=jnp.float32)      # (3*n_pad, H)
    mem_src = g[0:n_pad]
    mem_dst = g[n_pad:2 * n_pad]
    h = g[2 * n_pad:3 * n_pad]

    # (2) TimeEncoder: cos(Linear(1,T)(t_rel)).  Nodes without pending events
    #     (has == 0) must see an all-zero aggregated message (LastAggregator),
    #     so zero t_enc (src/dst one-hots are already zero via the sentinel).
    t_rel = fdata_ref[:, 0:1]
    has = fdata_ref[:, 1:2]
    raw = fdata_ref[:, 2:2 + R]
    twb = twb_ref[...]
    t_enc = jnp.cos(t_rel * twb[0:1, :] + twb[1:2, :]) * has

    # (3) GRU input slab at static lane offsets -> ONE bf16 gi dot + ONE gh dot.
    slab_ref[:, 0:H] = mem_src
    slab_ref[:, H:2 * H] = mem_dst
    slab_ref[:, 2 * H:2 * H + R] = raw
    slab_ref[:, 2 * H + R:2 * H + R + T] = t_enc
    if 2 * H + R + T < K_pad:
        slab_ref[:, 2 * H + R + T:] = jnp.zeros(
            (n_pad, K_pad - (2 * H + R + T)), jnp.float32)

    gi = jnp.dot(slab_ref[...].astype(jnp.bfloat16), wi_ref[...],
                 preferred_element_type=jnp.float32)                  # (n_pad, GATE_PAD)
    gh = jnp.dot(h.astype(jnp.bfloat16), wh_ref[...],
                 preferred_element_type=jnp.float32)                  # (n_pad, GATE_PAD)

    # (4) GRUCell, gate order [r | z | n]; r/z biases pre-folded host-side.
    b = b_ref[...]
    rz = jax.nn.sigmoid(gi[:, :2 * H] + gh[:, :2 * H] + b[:, :2 * H])
    r = rz[:, :H]
    z = rz[:, H:2 * H]
    n = jnp.tanh(gi[:, 2 * H:3 * H] + b[:, 2 * H:3 * H]
                 + r * (gh[:, 2 * H:3 * H] + b[:, 3 * H:4 * H]))
    new_rows = (1.0 - z) * n + z * h
    rows_ref[...] = new_rows

    # (5) Fused write-back: exact one-hot rank update of the full memory table.
    #     n_id rows are unique, sentinel slots give an all-zero one-hot column,
    #     so the update never touches unintended rows.
    iota_n = jax.lax.broadcasted_iota(jnp.int32, (num_nodes, n_pad), 0)
    oh_scat = (nidrow_ref[...] == iota_n).astype(jnp.float32)         # (num_nodes, n_pad)
    delta = jnp.dot(oh_scat, new_rows - h, preferred_element_type=jnp.float32)
    mem_out_ref[...] = mem + delta


def _round_up_bucket(n):
    n = max(int(n), 1)
    if n <= 16:          # bf16 operand sublane tile minimum
        return 16
    return 1 << (n - 1).bit_length()


# ----------------------------------------------------------------------------
# TGNMemory in JAX
# ----------------------------------------------------------------------------
class TGNMemoryJAX:
    def __init__(self, num_nodes, raw_msg_dim, memory_dim, time_dim, key):
        self.num_nodes = num_nodes
        self.raw_msg_dim = raw_msg_dim
        self.memory_dim = memory_dim
        self.time_dim = time_dim
        self.msg_dim = 2 * memory_dim + raw_msg_dim + time_dim
        self.training = True
        self._kernels = {}

        keys = jax.random.split(key, 14)
        u = lambda kk, shape, lo, hi: jax.random.uniform(kk, shape, jnp.float32, lo, hi)

        # TimeEncoder: Linear(1, time_dim) -> uniform(-1/sqrt(1), 1/sqrt(1))
        w_t = u(keys[0], (1, time_dim), -1.0, 1.0)
        b_t = u(keys[1], (1, time_dim), -1.0, 1.0)
        self.time_wb = jnp.concatenate([w_t, b_t], axis=0)                 # (2, T)

        # GRUCell(msg_dim, H) -> uniform(-1/sqrt(H), 1/sqrt(H)); pre-transposed,
        # gate order [r | z | n]; zero-padded to lane-dense slabs; bf16 MXU operands.
        H = memory_dim
        k = 1.0 / float(np.sqrt(H))
        w_ir = u(keys[2], (self.msg_dim, H), -k, k)
        w_iz = u(keys[3], (self.msg_dim, H), -k, k)
        w_in = u(keys[4], (self.msg_dim, H), -k, k)
        w_hr = u(keys[5], (H, H), -k, k)
        w_hz = u(keys[6], (H, H), -k, k)
        w_hn = u(keys[7], (H, H), -k, k)
        b_ir = u(keys[8], (1, H), -k, k)
        b_iz = u(keys[9], (1, H), -k, k)
        b_in = u(keys[10], (1, H), -k, k)
        b_hr = u(keys[11], (1, H), -k, k)
        b_hz = u(keys[12], (1, H), -k, k)
        b_hn = u(keys[13], (1, H), -k, k)

        w_i = jnp.concatenate([w_ir, w_iz, w_in], axis=1)                  # (msg_dim, 3H)
        w_h = jnp.concatenate([w_hr, w_hz, w_hn], axis=1)                  # (H, 3H)
        self.w_i = jnp.pad(w_i, ((0, K_PAD - self.msg_dim),
                                 (0, GATE_PAD - 3 * H))).astype(jnp.bfloat16)
        self.w_h = jnp.pad(w_h, ((0, 0),
                                 (0, GATE_PAD - 3 * H))).astype(jnp.bfloat16)
        # Fold biases: r/z gates pre-summed; n-gate biases stay separate.
        self.b_pack = jnp.concatenate(
            [b_ir + b_hr, b_iz + b_hz, b_in, b_hn], axis=1)                # (1, 4H)

        self.memory = jnp.zeros((num_nodes, memory_dim), jnp.float32)
        # NOTE: last_update kept as int64 on host; returned as int32 (overflow risk
        # only for timestamps >= 2^31, fine at demo scale).
        self.last_update = np.zeros((num_nodes,), np.int64)
        self._reset_message_store()

    # ---------------- kernel cache (one compile per (bucket, write_back)) -----
    def _get_kernel(self, n_pad, write_back):
        key = (n_pad, bool(write_back))
        fn = self._kernels.get(key)
        if fn is None:
            call = pl.pallas_call(
                _tgn_fused_kernel,
                out_shape=(
                    jax.ShapeDtypeStruct((self.num_nodes, self.memory_dim), jnp.float32),
                    jax.ShapeDtypeStruct((n_pad, self.memory_dim), jnp.float32),
                ),
                in_specs=[pl.BlockSpec(memory_space=pltpu.MemorySpace.VMEM)] * 8,
                out_specs=(pl.BlockSpec(memory_space=pltpu.MemorySpace.VMEM),
                           pl.BlockSpec(memory_space=pltpu.MemorySpace.VMEM)),
                scratch_shapes=[pltpu.VMEM((n_pad, K_PAD), jnp.float32)],
                input_output_aliases=({0: 0} if write_back else {}),
            )
            fn = jax.jit(call, donate_argnums=((0,) if write_back else ()))
            self._kernels[key] = fn
        return fn

    # ---------------- message store (host-side ragged bookkeeping) ------------
    # TODO(synk): the ragged per-node message store (dict of variable-length
    # tensors, sort + unique_consecutive) has no clean Pallas equivalent; it is
    # kept as host-side numpy bookkeeping.
    def _reset_message_store(self):
        i = np.zeros((0,), np.int32)
        m = np.zeros((0, self.raw_msg_dim), np.float32)
        self.msg_s_store = {j: (i, i, i, m) for j in range(self.num_nodes)}
        self.msg_d_store = {j: (i, i, i, m) for j in range(self.num_nodes)}

    def _update_msg_store(self, src, dst, t, raw_msg, store):
        src_np = np.asarray(src, np.int32)
        dst_np = np.asarray(dst, np.int32)
        t_np = np.asarray(t, np.int64)
        raw_np = np.asarray(raw_msg, np.float32)
        perm = np.argsort(src_np, kind='stable')
        uniq, counts = np.unique(src_np[perm], return_counts=True)
        splits = np.split(perm, np.cumsum(counts)[:-1])
        for i, idx in zip(uniq.tolist(), splits):
            store[int(i)] = (src_np[idx], dst_np[idx], t_np[idx], raw_np[idx])

    # ---------------- LastAggregator selection (host-side, tiny int arrays) ---
    def _gather_last_events(self, n_id_np):
        """Per node of n_id select the stored event with max t (LastAggregator),
        padded to a power-of-2 bucket so all kernel shapes stay static."""
        N = int(n_id_np.shape[0])
        n_pad = _round_up_bucket(N)
        sentinel = self.num_nodes  # -> all-zero one-hot row/column in the kernel
        src = np.full((n_pad,), sentinel, np.int32)
        dst = np.full((n_pad,), sentinel, np.int32)
        nid = np.full((n_pad,), sentinel, np.int32)
        t_sel = np.zeros((n_pad,), np.int64)
        fdata = np.zeros((n_pad, 2 + self.raw_msg_dim), np.float32)  # [t_rel|has|raw]

        for j, node in enumerate(n_id_np.tolist()):
            node = int(node)
            nid[j] = node
            s = self.msg_s_store[node]
            d = self.msg_d_store[node]
            ts = np.concatenate([s[2], d[2]])
            if ts.shape[0] == 0:
                continue
            # last occurrence of max t (matches prior tie-break: largest position)
            k = ts.shape[0] - 1 - int(np.argmax(ts[::-1]))
            srcs = np.concatenate([s[0], d[0]])
            dsts = np.concatenate([s[1], d[1]])
            raws = np.concatenate([s[3], d[3]], axis=0)
            src[j] = srcs[k]
            dst[j] = dsts[k]
            t_sel[j] = ts[k]
            # NOTE: int64 t -> float32 t_rel loses precision only for |t| > 2^24.
            fdata[j, 0] = float(ts[k] - self.last_update[int(srcs[k])])
            fdata[j, 1] = 1.0
            fdata[j, 2:] = raws[k]

        idx_col = np.concatenate([src, dst, nid]).reshape(3 * n_pad, 1)   # (3n_pad,1)
        nid_row = nid.reshape(1, n_pad)                                    # (1,n_pad)
        # scatter(t, idx, reduce='max') with zero fill for nodes without events
        # (matches PyG's scatter-max quirk).
        lu_new = np.where(fdata[:N, 1] > 0.5, t_sel[:N], 0).astype(np.int64)
        return n_pad, idx_col, nid_row, fdata, lu_new

    # ---------------- memory computation --------------------------------------
    def _run_kernel(self, n_id_np, write_back):
        n_pad, idx_col, nid_row, fdata, lu_new = self._gather_last_events(n_id_np)
        fn = self._get_kernel(n_pad, write_back)
        new_mem, rows = fn(self.memory,
                           jnp.asarray(idx_col), jnp.asarray(nid_row),
                           jnp.asarray(fdata),
                           self.time_wb, self.w_i, self.w_h, self.b_pack)
        return new_mem, rows, lu_new

    def _update_memory(self, n_id_np):
        new_mem, _, lu_new = self._run_kernel(n_id_np, write_back=True)
        self.memory = new_mem                 # write-back fused in-kernel (aliased)
        self.last_update[n_id_np] = lu_new

    # ---------------- public API ----------------------------------------------
    def forward(self, n_id):
        n_id_np = np.asarray(n_id, np.int32)
        N = int(n_id_np.shape[0])
        if self.training:
            _, rows, lu_new = self._run_kernel(n_id_np, write_back=False)
            return rows[:N], jnp.asarray(lu_new.astype(np.int32))
        mem = self.memory[jnp.asarray(n_id_np)]
        lu = jnp.asarray(self.last_update[n_id_np].astype(np.int32))
        return mem, lu

    def update_state(self, src, dst, t, raw_msg):
        src_np = np.asarray(src, np.int32)
        dst_np = np.asarray(dst, np.int32)
        n_id = np.unique(np.concatenate([src_np, dst_np]))
        if self.training:
            self._update_memory(n_id)
            self._update_msg_store(src, dst, t, raw_msg, self.msg_s_store)
            self._update_msg_store(dst, src, t, raw_msg, self.msg_d_store)
        else:
            self._update_msg_store(src, dst, t, raw_msg, self.msg_s_store)
            self._update_msg_store(dst, src, t, raw_msg, self.msg_d_store)
            self._update_memory(n_id)


# ----------------------------------------------------------------------------
if __name__ == "__main__":
    key = jax.random.PRNGKey(0)
    pkey, ekey = jax.random.split(key)

    tgn = TGNMemoryJAX(NUM_NODES, RAW_MSG_DIM, MEMORY_DIM, TIME_DIM, pkey)
    tgn.training = True

    k1, k2, k3, k4 = jax.random.split(ekey, 4)
    E = 12
    src = jax.random.randint(k1, (E,), 0, NUM_NODES, dtype=jnp.int32)
    dst = jax.random.randint(k2, (E,), 0, NUM_NODES, dtype=jnp.int32)
    t = jnp.sort(jax.random.randint(k3, (E,), 0, 100, dtype=jnp.int32))
    raw_msg = jax.random.normal(k4, (E, RAW_MSG_DIM), jnp.float32)

    # Update state with a batch of interactions (fused memory update + msg store).
    tgn.update_state(src, dst, t, raw_msg)

    # Training-mode forward: computes updated memory from stored messages via the
    # single fused Pallas kernel (gather + time-enc + message + GRU [+ scatter]).
    n_id = np.unique(np.concatenate([np.asarray(src), np.asarray(dst)]))
    memory, last_update = tgn.forward(n_id)
    jax.block_until_ready(memory)
    jax.block_until_ready(last_update)
    jax.block_until_ready(tgn.memory)

    assert memory.shape == (n_id.shape[0], MEMORY_DIM)
    assert memory.dtype == jnp.float32
    assert last_update.shape == (n_id.shape[0],)
    assert bool(jnp.all(jnp.isfinite(memory)))
    assert bool(jnp.all(jnp.isfinite(tgn.memory)))

    print("KERNEL_OK")
</pallas_src>

<mosaic_0001>
module attributes {stable_mosaic.version = 11 : i64} {
  func.func @_tgn_fused_kernel(%arg0: memref<32x32xf32, #tpu.memory_space<vmem>>, %arg1: memref<96x1xi32, #tpu.memory_space<vmem>>, %arg2: memref<1x32xi32, #tpu.memory_space<vmem>>, %arg3: memref<32x18xf32, #tpu.memory_space<vmem>>, %arg4: memref<2x32xf32, #tpu.memory_space<vmem>>, %arg5: memref<128x128xbf16, #tpu.memory_space<vmem>>, %arg6: memref<32x128xbf16, #tpu.memory_space<vmem>>, %arg7: memref<1x128xf32, #tpu.memory_space<vmem>>, %arg8: memref<32x32xf32, #tpu.memory_space<vmem>>, %arg9: memref<32x32xf32, #tpu.memory_space<vmem>>, %arg10: memref<32x128xf32, #tpu.memory_space<vmem>>) attributes {dimension_semantics = [], scalar_prefetch = 0 : i64, scratch_operands = 1 : i64, tpu.core_type = #tpu.core_type<tc>} {
    %c0 = arith.constant 0 : index
    %c0_0 = arith.constant 0 : index
    %0 = vector.load %arg0[%c0, %c0_0] : memref<32x32xf32, #tpu.memory_space<vmem>>, vector<32x32xf32>
    %1 = tpu.iota {dimensions = array<i32: 1>} : vector<96x32xi32>
    %c0_1 = arith.constant 0 : index
    %c0_2 = arith.constant 0 : index
    %2 = vector.load %arg1[%c0_1, %c0_2] : memref<96x1xi32, #tpu.memory_space<vmem>>, vector<96x1xi32>
    %3 = vector.broadcast %2 : vector<96x1xi32> to vector<96x32xi32>
    %4 = arith.cmpi eq, %3, %1 : vector<96x32xi32>
    %5 = arith.extui %4 : vector<96x32xi1> to vector<96x32xi32>
    %6 = arith.sitofp %5 : vector<96x32xi32> to vector<96x32xf32>
    %cst = arith.constant dense<0.000000e+00> : vector<96x32xf32>
    %7 = tpu.matmul %6, %0, %cst {dimension_numbers = #tpu.dot_dimension_numbers<[1], [0], [0], [1], [0, 0, 1, 1], [], []>} : vector<96x32xf32>, vector<32x32xf32>, vector<96x32xf32> -> vector<96x32xf32>
    %8 = vector.extract_strided_slice %7 {offsets = [0, 0], sizes = [32, 32], strides = [1, 1]} : vector<96x32xf32> to vector<32x32xf32>
    %9 = vector.extract_strided_slice %7 {offsets = [32, 0], sizes = [32, 32], strides = [1, 1]} : vector<96x32xf32> to vector<32x32xf32>
    %10 = vector.extract_strided_slice %7 {offsets = [64, 0], sizes = [32, 32], strides = [1, 1]} : vector<96x32xf32> to vector<32x32xf32>
    %c0_3 = arith.constant 0 : index
    %c0_4 = arith.constant 0 : index
    %11 = vector.load %arg3[%c0_3, %c0_4] : memref<32x18xf32, #tpu.memory_space<vmem>>, vector<32x1xf32>
    %c0_5 = arith.constant 0 : index
    %c1 = arith.constant 1 : index
    %12 = vector.load %arg3[%c0_5, %c1] : memref<32x18xf32, #tpu.memory_space<vmem>>, vector<32x1xf32>
    %c0_6 = arith.constant 0 : index
    %c2 = arith.constant 2 : index
    %13 = vector.load %arg3[%c0_6, %c2] : memref<32x18xf32, #tpu.memory_space<vmem>>, vector<32x16xf32>
    %c0_7 = arith.constant 0 : index
    %c0_8 = arith.constant 0 : index
    %14 = vector.load %arg4[%c0_7, %c0_8] : memref<2x32xf32, #tpu.memory_space<vmem>>, vector<2x32xf32>
    %15 = vector.extract_strided_slice %14 {offsets = [0, 0], sizes = [1, 32], strides = [1, 1]} : vector<2x32xf32> to vector<1x32xf32>
    %16 = vector.broadcast %11 : vector<32x1xf32> to vector<32x32xf32>
    %17 = vector.broadcast %15 : vector<1x32xf32> to vector<32x32xf32>
    %18 = arith.mulf %16, %17 : vector<32x32xf32>
    %19 = vector.extract_strided_slice %14 {offsets = [1, 0], sizes = [1, 32], strides = [1, 1]} : vector<2x32xf32> to vector<1x32xf32>
    %20 = vector.broadcast %19 : vector<1x32xf32> to vector<32x32xf32>
    %21 = arith.addf %18, %20 : vector<32x32xf32>
    %22 = math.cos %21 : vector<32x32xf32>
    %23 = vector.broadcast %12 : vector<32x1xf32> to vector<32x32xf32>
    %24 = arith.mulf %22, %23 : vector<32x32xf32>
    %c0_9 = arith.constant 0 : index
    %c0_10 = arith.constant 0 : index
    %25 = vector.load %arg10[%c0_9, %c0_10] : memref<32x128xf32, #tpu.memory_space<vmem>>, vector<32x32xf32>
    tpu.vector_store %arg10[%c0_9, %c0_10], %8 {strides = array<i32>} : memref<32x128xf32, #tpu.memory_space<vmem>>, vector<32x32xf32>,
    %c0_11 = arith.constant 0 : index
    %c32 = arith.constant 32 : index
    %26 = vector.load %arg10[%c0_11, %c32] : memref<32x128xf32, #tpu.memory_space<vmem>>, vector<32x32xf32>
    tpu.vector_store %arg10[%c0_11, %c32], %9 {strides = array<i32>} : memref<32x128xf32, #tpu.memory_space<vmem>>, vector<32x32xf32>,
    %c0_12 = arith.constant 0 : index
    %c64 = arith.constant 64 : index
    %27 = vector.load %arg10[%c0_12, %c64] : memref<32x128xf32, #tpu.memory_space<vmem>>, vector<32x16xf32>
    tpu.vector_store %arg10[%c0_12, %c64], %13 {strides = array<i32>} : memref<32x128xf32, #tpu.memory_space<vmem>>, vector<32x16xf32>,
    %c0_13 = arith.constant 0 : index
    %c80 = arith.constant 80 : index
    %28 = vector.load %arg10[%c0_13, %c80] : memref<32x128xf32, #tpu.memory_space<vmem>>, vector<32x32xf32>
    tpu.vector_store %arg10[%c0_13, %c80], %24 {strides = array<i32>} : memref<32x128xf32, #tpu.memory_space<vmem>>, vector<32x32xf32>,
    %cst_14 = arith.constant 0.000000e+00 : f32
    %29 = vector.broadcast %cst_14 : f32 to vector<32x16xf32>
    %c0_15 = arith.constant 0 : index
    %c112 = arith.constant 112 : index
    %30 = vector.load %arg10[%c0_15, %c112] : memref<32x128xf32, #tpu.memory_space<vmem>>, vector<32x16xf32>
    tpu.vector_store %arg10[%c0_15, %c112], %29 {strides = array<i32>} : memref<32x128xf32, #tpu.memory_space<vmem>>, vector<32x16xf32>,
    %c0_16 = arith.constant 0 : index
    %c0_17 = arith.constant 0 : index
    %31 = vector.load %arg10[%c0_16, %c0_17] : memref<32x128xf32, #tpu.memory_space<vmem>>, vector<32x128xf32>
    %32 = arith.truncf %31 : vector<32x128xf32> to vector<32x128xbf16>
    %c0_18 = arith.constant 0 : index
    %c0_19 = arith.constant 0 : index
    %33 = vector.load %arg5[%c0_18, %c0_19] : memref<128x128xbf16, #tpu.memory_space<vmem>>, vector<128x128xbf16>
    %cst_20 = arith.constant dense<0.000000e+00> : vector<32x128xf32>
    %34 = tpu.matmul %32, %33, %cst_20 {dimension_numbers = #tpu.dot_dimension_numbers<[1], [0], [0], [1], [0, 0, 1, 1], [], []>} : vector<32x128xbf16>, vector<128x128xbf16>, vector<32x128xf32> -> vector<32x128xf32>
    %35 = arith.truncf %10 : vector<32x32xf32> to vector<32x32xbf16>
    %c0_21 = arith.constant 0 : index
    %c0_22 = arith.constant 0 : index
    %36 = vector.load %arg6[%c0_21, %c0_22] : memref<32x128xbf16, #tpu.memory_space<vmem>>, vector<32x128xbf16>
    %cst_23 = arith.constant dense<0.000000e+00> : vector<32x128xf32>
    %37 = tpu.matmul %35, %36, %cst_23 {dimension_numbers = #tpu.dot_dimension_numbers<[1], [0], [0], [1], [0, 0, 1, 1], [], []>} : vector<32x32xbf16>, vector<32x128xbf16>, vector<32x128xf32> -> vector<32x128xf32>
    %c0_24 = arith.constant 0 : index
    %c0_25 = arith.constant 0 : index
    %38 = vector.load %arg7[%c0_24, %c0_25] : memref<1x128xf32, #tpu.memory_space<vmem>>, vector<1x128xf32>
    %39 = vector.extract_strided_slice %34 {offsets = [0, 0], sizes = [32, 64], strides = [1, 1]} : vector<32x128xf32> to vector<32x64xf32>
    %40 = vector.extract_strided_slice %37 {offsets = [0, 0], sizes = [32, 64], strides = [1, 1]} : vector<32x128xf32> to vector<32x64xf32>
    %41 = arith.addf %39, %40 : vector<32x64xf32>
    %42 = vector.extract_strided_slice %38 {offsets = [0, 0], sizes = [1, 64], strides = [1, 1]} : vector<1x128xf32> to vector<1x64xf32>
    %43 = vector.broadcast %42 : vector<1x64xf32> to vector<32x64xf32>
    %44 = arith.addf %41, %43 : vector<32x64xf32>
    %45 = arith.negf %44 : vector<32x64xf32>
    %46 = math.exp %45 : vector<32x64xf32>
    %cst_26 = arith.constant 1.000000e+00 : f32
    %47 = vector.broadcast %cst_26 : f32 to vector<32x64xf32>
    %48 = arith.addf %47, %46 : vector<32x64xf32>
    %49 = arith.divf %47, %48 : vector<32x64xf32>
    %50 = vector.extract_strided_slice %49 {offsets = [0, 0], sizes = [32, 32], strides = [1, 1]} : vector<32x64xf32> to vector<32x32xf32>
    %51 = vector.extract_strided_slice %49 {offsets = [0, 32], sizes = [32, 32], strides = [1, 1]} : vector<32x64xf32> to vector<32x32xf32>
    %52 = vector.extract_strided_slice %34 {offsets = [0, 64], sizes = [32, 32], strides = [1, 1]} : vector<32x128xf32> to vector<32x32xf32>
    %53 = vector.extract_strided_slice %38 {offsets = [0, 64], sizes = [1, 32], strides = [1, 1]} : vector<1x128xf32> to vector<1x32xf32>
    %54 = vector.broadcast %53 : vector<1x32xf32> to vector<32x32xf32>
    %55 = arith.addf %52, %54 : vector<32x32xf32>
    %56 = vector.extract_strided_slice %37 {offsets = [0, 64], sizes = [32, 32], strides = [1, 1]} : vector<32x128xf32> to vector<32x32xf32>
    %57 = vector.extract_strided_slice %38 {offsets = [0, 96], sizes = [1, 32], strides = [1, 1]} : vector<1x128xf32> to vector<1x32xf32>
    %58 = vector.broadcast %57 : vector<1x32xf32> to vector<32x32xf32>
    %59 = arith.addf %56, %58 : vector<32x32xf32>
    %60 = arith.mulf %50, %59 : vector<32x32xf32>
    %61 = arith.addf %55, %60 : vector<32x32xf32>
    %62 = math.tanh %61 : vector<32x32xf32>
    %cst_27 = arith.constant 1.000000e+00 : f32
    %63 = vector.broadcast %cst_27 : f32 to vector<32x32xf32>
    %64 = arith.subf %63, %51 : vector<32x32xf32>
    %65 = arith.mulf %64, %62 : vector<32x32xf32>
    %66 = arith.mulf %51, %10 : vector<32x32xf32>
    %67 = arith.addf %65, %66 : vector<32x32xf32>
    %c0_28 = arith.constant 0 : index
    %c0_29 = arith.constant 0 : index
    %68 = vector.load %arg9[%c0_28, %c0_29] : memref<32x32xf32, #tpu.memory_space<vmem>>, vector<32x32xf32>
    tpu.vector_store %arg9[%c0_28, %c0_29], %67 {strides = array<i32>} : memref<32x32xf32, #tpu.memory_space<vmem>>, vector<32x32xf32>,
    %69 = tpu.iota {dimensions = array<i32: 0>} : vector<32x32xi32>
    %c0_30 = arith.constant 0 : index
    %c0_31 = arith.constant 0 : index
    %70 = vector.load %arg2[%c0_30, %c0_31] : memref<1x32xi32, #tpu.memory_space<vmem>>, vector<1x32xi32>
    %71 = vector.broadcast %70 : vector<1x32xi32> to vector<32x32xi32>
    %72 = arith.cmpi eq, %71, %69 : vector<32x32xi32>
    %73 = arith.extui %72 : vector<32x32xi1> to vector<32x32xi32>
    %74 = arith.sitofp %73 : vector<32x32xi32> to vector<32x32xf32>
    %75 = arith.subf %67, %10 : vector<32x32xf32>
    %cst_32 = arith.constant dense<0.000000e+00> : vector<32x32xf32>
    %76 = tpu.matmul %74, %75, %cst_32 {dimension_numbers = #tpu.dot_dimension_numbers<[1], [0], [0], [1], [0, 0, 1, 1], [], []>} : vector<32x32xf32>, vector<32x32xf32>, vector<32x32xf32> -> vector<32x32xf32>
    %77 = arith.addf %0, %76 : vector<32x32xf32>
    %c0_33 = arith.constant 0 : index
    %c0_34 = arith.constant 0 : index
    %78 = vector.load %arg8[%c0_33, %c0_34] : memref<32x32xf32, #tpu.memory_space<vmem>>, vector<32x32xf32>
    tpu.vector_store %arg8[%c0_33, %c0_34], %77 {strides = array<i32>} : memref<32x32xf32, #tpu.memory_space<vmem>>, vector<32x32xf32>,
    return
  }
}

</mosaic_0001>

<bundles_post_ra>
// kernel: tpu_custom_call.1
= control target key start
LH: loop header
LB: loop body
LE: loop exit
PB: predicated region body
PF: predicated region fallthrough
CT: control target
= control target key end

     0   :  { %15 = vsyncpa [#allocation4], 0  ;;  %s2365_s0 = inlined_call_operand.hbm [shape: f32[32,32], index: 0, kind: input, shape index: {}, may-alias: {0,8}]   ;;  %s2366_s1 = inlined_call_operand.vmem [shape: s32[96,1], index: 1, kind: input, shape index: {}]   ;;  %s2367_s2 = inlined_call_operand.vmem [shape: s32[1,32], index: 2, kind: input, shape index: {}]   ;;  %s2368_s3 = inlined_call_operand.vmem [shape: f32[32,18], index: 3, kind: input, shape index: {}]   ;;  %s2369_s4 = inlined_call_operand.vmem [shape: f32[2,32], index: 4, kind: input, shape index: {}]   ;;  %s2370_s5 = inlined_call_operand.vmem [shape: bf16[128,128], index: 5, kind: input, shape index: {}]   ;;  %s2371_s6 = inlined_call_operand.vmem [shape: bf16[32,128], index: 6, kind: input, shape index: {}]   ;;  %s2372_s7 = inlined_call_operand.vmem [shape: f32[1,128], index: 7, kind: input, shape index: {}]   ;;  %s2373_s8 = inlined_call_operand.hbm [shape: f32[32,32], index: 8, kind: output, shape index: {0}, may-alias: {0,8}]   ;;  %s2374_s9 = inlined_call_operand.hbm [shape: f32[32,32], index: 9, kind: output, shape index: {1}]  }
   0x1   :  { %16 = vsyncpa [#allocation5], 0 }
   0x2   :  { %17 = vsyncpa [#allocation8], 0  ;;  %s1742_s30 = smov [#allocation3]   ;;  %s1670_s13 = scalar_lea.hbm %s2365_s0, 512 }
   0x3   :  { %s23_s10 = sshll.u32 %s1742_s30, 4  ;;  %p1671_p0 = scmp.ne.s32.totalorder %s2365_s0, %s1670_s13  ;;  %s24_s10 = int_to_ptr.vmem [resolvable:$true] %s23_s10 }
   0x4   :  { %p1674_p1 = scmp.lt.u32.totalorder %s1670_s13, %s2365_s0 }
   0x6   :  { %p1676_p2 = pnand %p1674_p1, %p1671_p0 }
   0x8   :  { %1679 = shalt.err (!%p1676_p2)
}
   0x9   :  { %s1680_s18 = scalar_lea.vmem %s24_s10, 512  ;;  %p1685_p4 = scmp.lt.s32.totalorder %s24_s10, %s24_s10 }
   0xa   :  { %p1681_p3 = scmp.ne.s32.totalorder %s24_s10, %s1680_s18  ;;  %p1686_p5 = scmp.lt.s32.totalorder %s1680_s18, %s1680_s18 }
   0xc   :  { %p1687_p6 = por %p1686_p5, %p1685_p4 }
   0xe   :  { %p1688_p7 = pnand %p1687_p6, %p1681_p3 }
  0x10   :  { %1691 = shalt.err (!%p1688_p7)
}
  0x11   :  { %s1743_s19 = smov 128   ;;  %s1744_s20 = smov 8  }
  0x12   :  { %29 = dma.hbm_to_vmem [thread:$0]  %s2365_s0, 512, %s24_s10, [#allocation4], %s1743_s19, %s1743_s19, %s1744_s20  }
  0x13   :  { %1736 = dma.done.wait [#allocation4], 512  }
  0x14   :  { %1737 = vsyncadd [#allocation4], 4294966784  ;;  %v1745_v0 = vmov 0   ;;  %v56_v1 = vld [vmem:[%s2366_s1 + $0x10] sm:$0xff]  ;;  %v54_v2 = vld [vmem:[%s2366_s1] sm:$0xff]  ;;  %v1746_v23 = vmov 1   ;;  %v52_v24 = vlaneseq }
  0x15   :  { %1603 = vset.pattern.permute.xlu1 %v1745_v0  ;;  %1602 = vset.pattern.permute.xlu0 %v1745_v0  ;;  %v57_v3 = vld [vmem:[%s2366_s1 + $0x18] sm:$0xff]  ;;  %v55_v4 = vld [vmem:[%s2366_s1 + $0x8] sm:$0xff]  ;;  %v58_v6 = vld [vmem:[%s2366_s1 + $0x20] sm:$0xff]  ;;  %vm138_vm0 = vcmask 261120   ;;  %v1748_v28 = vmov 0.0   ;;  %s1755_s17 = smov 80  }
  0x16   :  { %73 = vperm.xlu1 %1603, %v56_v1   ;;  %67 = vperm.xlu0 %1602, %v54_v2   ;;  %v59_v5 = vld [vmem:[%s2366_s1 + $0x28] sm:$0xff]  ;;  %v48_v7 = vld [vmem:[#allocation3] sm:$0xff]  ;;  %v50_v10 = vld [vmem:[#allocation3 + $0x10] sm:$0xff]  ;;  %v53_v25 = vand.u32 127, %v52_v24  ;;  %v1884_v40 = vshrl.u32 %v52_v24, 7  ;;  %s1756_s11 = smov 32  }
  0x17   :  { %v49_v8 = vld [vmem:[#allocation3 + $0x8] sm:$0xff]  ;;  %v51_v11 = vld [vmem:[#allocation3 + $0x18] sm:$0xff]  ;;  %v60_v14 = vld [vmem:[%s2366_s1 + $0x30] sm:$0xff]  ;;  %s1757_s13 = smov 96  }
  0x18   :  { %v1547_v9 = vpack.c.bf16 %v49_v8, %v48_v7  ;;  %v1551_v12 = vpack.c.bf16 %v51_v11, %v50_v10  ;;  %v61_v13 = vld [vmem:[%s2366_s1 + $0x38] sm:$0xff]  ;;  %v63_v15 = vld [vmem:[%s2366_s1 + $0x48] sm:$0xff]  ;;  %v62_v16 = vld [vmem:[%s2366_s1 + $0x40] sm:$0xff]  ;;  %v327_v45 = vsub.s32 0, %v1884_v40  ;;  %v335_v49 = vsub.s32 1, %v1884_v40 }
  0x19   :  { %v65_v17 = vld [vmem:[%s2366_s1 + $0x58] sm:$0xff]  ;;  %v64_v18 = vld [vmem:[%s2366_s1 + $0x50] sm:$0xff]  ;;  %v301_v19 = vld [vmem:[%s2368_s3 + $0x8] sm:$0xff]  ;;  %s1747_s1 = smov 62  }
  0x1a   :  { %76 = vperm.xlu1 %1603, %v57_v3   ;;  %70 = vperm.xlu0 %1602, %v55_v4   ;;  %v300_v20 = vld [vmem:[%s2368_s3] sm:$0xff]  ;;  %v303_v21 = vld [vmem:[%s2368_s3 + $0x18] sm:$0xff]  ;;  %v302_v22 = vld [vmem:[%s2368_s3 + $0x10] sm:$0xff] }
  0x1b   :  { %1548 = vmatprep.subr.bf16.mxu0 %v1547_v9  ;;  %v304_v48 = vld [vmem:[%s2369_s4] sm:$0x3] }
  0x1c   :  { %1550 = vmatpush3.bf16.msra.mxu0 %v1547_v9  ;;  %v328_v52 = vrot.slane %v304_v48, %v327_v45  ;;  %v336_v55 = vrot.slane %v304_v48, %v335_v49 }
  0x1d   :  { %1552 = vmatprep.subr.bf16.mxu0 %v1551_v12 }
  0x1e   :  { %82 = vperm.xlu1 %1603, %v59_v5   ;;  %79 = vperm.xlu0 %1602, %v58_v6  }
  0x20   :  { %1554 = vmatpush3.bf16.msra.mxu0 %v1551_v12 }
  0x22   :  { %88 = vperm.xlu1 %1603, %v61_v13   ;;  %85 = vperm.xlu0 %1602, %v60_v14  }
  0x26   :  { %94 = vperm.xlu1 %1603, %v63_v15   ;;  %91 = vperm.xlu0 %1602, %v62_v16  }
  0x2a   :  { %100 = vperm.xlu1 %1603, %v65_v17   ;;  %97 = vperm.xlu0 %1602, %v64_v18  }
  0x2e   :  { %312 = vperm.xlu1 %1603, %v301_v19   ;;  %307 = vperm.xlu0 %1602, %v300_v20  }
  0x32   :  { %322 = vperm.xlu1 %1603, %v303_v21   ;;  %317 = vperm.xlu0 %1602, %v302_v22  }
  0x36   :  { %1605 = vset.pattern.permute.xlu1 %v1746_v23  ;;  %1604 = vset.pattern.permute.xlu0 %v1746_v23 }
  0x37   :  { %758 = vperm.xlu1 %1605, %v301_v19   ;;  %754 = vperm.xlu0 %1604, %v300_v20  }
  0x3b   :  { %762 = vperm.xlu1 %1605, %v302_v22   ;;  %766 = vperm.xlu0 %1604, %v303_v21  }
  0x3f   :  { %798 = vrot.lane.b32.xlu1 %v300_v20, %s1747_s1  ;;  %800 = vrot.lane.b32.xlu0 %v301_v19, %s1747_s1 }
  0x43   :  { %802 = vrot.lane.b32.xlu1 %v302_v22, %s1747_s1  ;;  %804 = vrot.lane.b32.xlu0 %v303_v21, %s1747_s1 }
  0x95   :  { %v74_v26 = vpop.permute.xlu1 %73  ;;  %v68_v27 = vpop.permute.xlu0 %67 }
  0x96   :  { %vm102_vm1 = vcmp.eq.s32.totalorder %v68_v27, %v53_v25  ;;  %vm104_vm2 = vcmp.eq.s32.totalorder %v74_v26, %v53_v25 }
  0x97   :  { %v1375_v29 = vsel %vm102_vm1, 1.0, %v1748_v28  ;;  %v1377_v32 = vsel %vm104_vm2, 1.0, %v1748_v28 }
  0x98   :  { %1487 = vmatprep.mubr.msk.f32.mxu0 %vm138_vm0, %v1375_v29 }
  0x99   :  { %v77_v30 = vpop.permute.xlu1 %76  ;;  %v71_v31 = vpop.permute.xlu0 %70 }
  0x9a   :  { %vm103_vm3 = vcmp.eq.s32.totalorder %v71_v31, %v53_v25  ;;  %vm105_vm4 = vcmp.eq.s32.totalorder %v77_v30, %v53_v25 }
  0x9b   :  { %v1376_v33 = vsel %vm103_vm3, 1.0, %v1748_v28  ;;  %v1378_v36 = vsel %vm105_vm4, 1.0, %v1748_v28 }
  0x9c   :  { %1488 = vmatmul.mubr.msk.f32.vlgmr.msra.gmra.mrb[0].mxu0 %vm138_vm0, %v1376_v33 }
  0x9d   :  { %v83_v34 = vpop.permute.xlu1 %82  ;;  %v80_v35 = vpop.permute.xlu0 %79  ;;  %1490 = vmatprep.mubr.msk.f32.mxu0 %vm138_vm0, %v1377_v32 }
  0x9e   :  { %vm106_vm5 = vcmp.eq.s32.totalorder %v80_v35, %v53_v25  ;;  %vm107_vm6 = vcmp.eq.s32.totalorder %v83_v34, %v53_v25 }
  0x9f   :  { %v1379_v37 = vsel %vm106_vm5, 1.0, %v1748_v28  ;;  %v1380_v41 = vsel %vm107_vm6, 1.0, %v1748_v28 }
  0xa0   :  { %1491 = vmatmul.mubr.msk.f32.gmra.mrb[2].mxu0 %vm138_vm0, %v1378_v36 }
  0xa1   :  { %v89_v38 = vpop.permute.xlu1 %88  ;;  %v86_v39 = vpop.permute.xlu0 %85  ;;  %1493 = vmatprep.mubr.msk.f32.mxu0 %vm138_vm0, %v1379_v37  ;;  %v1749_v37 = vmov 683565275  }
  0xa2   :  { %vm108_vm7 = vcmp.eq.s32.totalorder %v86_v39, %v53_v25  ;;  %vm109_vm8 = vcmp.eq.s32.totalorder %v89_v38, %v53_v25  ;;  %v1750_v39 = vmov 2475754826  }
  0xa3   :  { %v1381_v42 = vsel %vm108_vm7, 1.0, %v1748_v28  ;;  %v1382_v46 = vsel %vm109_vm8, 1.0, %v1748_v28 }
  0xa4   :  { %1494 = vmatmul.mubr.msk.f32.gmra.mrb[4].mxu0 %vm138_vm0, %v1380_v41 }
  0xa5   :  { %v95_v43 = vpop.permute.xlu1 %94  ;;  %v92_v44 = vpop.permute.xlu0 %91  ;;  %1496 = vmatprep.mubr.msk.f32.mxu0 %vm138_vm0, %v1381_v42 }
  0xa6   :  { %vm110_vm9 = vcmp.eq.s32.totalorder %v92_v44, %v53_v25  ;;  %vm111_vm10 = vcmp.eq.s32.totalorder %v95_v43, %v53_v25  ;;  %v1751_v44 = vmov 2131351028  }
  0xa7   :  { %v1383_v47 = vsel %vm110_vm9, 1.0, %v1748_v28  ;;  %v1384_v53 = vsel %vm111_vm10, 1.0, %v1748_v28 }
  0xa8   :  { %1497 = vmatmul.mubr.msk.f32.gmra.mrb[6].mxu0 %vm138_vm0, %v1382_v46  ;;  %v1752_v46 = vmov 2102212464  }
  0xa9   :  { %v101_v50 = vpop.permute.xlu1 %100  ;;  %v98_v51 = vpop.permute.xlu0 %97  ;;  %1499 = vmatprep.mubr.msk.f32.mxu0 %vm138_vm0, %v1383_v47 }
  0xaa   :  { %vm112_vm11 = vcmp.eq.s32.totalorder %v98_v51, %v53_v25  ;;  %vm113_vm12 = vcmp.eq.s32.totalorder %v101_v50, %v53_v25  ;;  %v1753_v51 = vmov 920167782  }
  0xab   :  { %v1385_v54 = vsel %vm112_vm11, 1.0, %v1748_v28  ;;  %v1386_v60 = vsel %vm113_vm12, 1.0, %v1748_v28 }
  0xac   :  { %1500 = vmatmul.mubr.msk.f32.gmra.mrb[8].mxu0 %vm138_vm0, %v1384_v53 }
  0xad   :  { %v313_v56 = vpop.permute.xlu1 %312  ;;  %v308_v57 = vpop.permute.xlu0 %307  ;;  %1502 = vmatprep.mubr.msk.f32.mxu0 %vm138_vm0, %v1385_v54 }
  0xae   :  { %v330_v58 = vmul.f32 %v328_v52, %v313_v56  ;;  %v329_v59 = vmul.f32 %v328_v52, %v308_v57  ;;  %v1754_v56 = vmov 1326507024  }
  0xb0   :  { %v1904_v61 = vadd.f32 %v336_v55, %v330_v58  ;;  %v1906_v62 = vadd.f32 %v336_v55, %v329_v59  ;;  %1503 = vmatmul.mubr.msk.f32.gmra.mrb[10].mxu0 %vm138_vm0, %v1386_v60 }
  0xb1   :  { %v323_v63 = vpop.permute.xlu1 %322  ;;  %v318_v0 = vpop.permute.xlu0 %317 }
  0xb2   :  { %v447_v1 = vand.u32 2139095040, %v1904_v61  ;;  %v344_v2 = vand.u32 2139095040, %v1906_v62  ;;  %v332_v3 = vmul.f32 %v328_v52, %v323_v63  ;;  %v331_v4 = vmul.f32 %v328_v52, %v318_v0 }
  0xb3   :  { %v444_v5 = vand.u32 2147483647, %v1904_v61  ;;  %v341_v6 = vand.u32 2147483647, %v1906_v62 }
  0xb4   :  { %v448_v7 = vshrl.u32 %v447_v1, 23  ;;  %v345_v8 = vshrl.u32 %v344_v2, 23  ;;  %v1913_v9 = vadd.f32 %v336_v55, %v332_v3  ;;  %v1915_v10 = vadd.f32 %v336_v55, %v331_v4 }
  0xb5   :  { %v451_v14 = vand.u32 8388607, %v444_v5  ;;  %v348_v16 = vand.u32 8388607, %v341_v6 }
  0xb6   :  { %v1403_v11 = vadd.s32 4294967169, %v448_v7  ;;  %v1399_v12 = vadd.s32 4294967169, %v345_v8  ;;  %v550_v13 = vand.u32 2139095040, %v1915_v10  ;;  %v653_v15 = vand.u32 2139095040, %v1913_v9 }
  0xb7   :  { %v452_v21 = vor.u32 8388608, %v451_v14  ;;  %v349_v25 = vor.u32 8388608, %v348_v16  ;;  %v547_v31 = vand.u32 2147483647, %v1915_v10 }
  0xb8   :  { %v454_v17 = vadd.s32 1, %v1403_v11  ;;  %v351_v18 = vadd.s32 1, %v1399_v12  ;;  %v551_v19 = vshrl.u32 %v550_v13, 23  ;;  %v654_v24 = vshrl.u32 %v653_v15, 23 }
  0xb9   :  { %v1926_v34 = vshll.u32 %v452_v21, 8  ;;  %v1928_v35 = vshll.u32 %v349_v25, 8 }
  0xba   :  { %vm455_vm13 = vcmp.gt.s32.totalorder %v454_v17, 0  ;;  %vm352_vm14 = vcmp.gt.s32.totalorder %v351_v18, 0  ;;  %v1407_v20 = vadd.s32 4294967169, %v551_v19  ;;  %v1411_v33 = vadd.s32 4294967169, %v654_v24 }
  0xbb   :  { %v456_v22 = vsel %vm455_vm13, %v454_v17, 0  ;;  %v353_v23 = vsel %vm352_vm14, %v351_v18, 0 }
  0xbc   :  { %v458_v26 = vand.u32 31, %v456_v22  ;;  %v1923_v27 = vand.u32 31, %v353_v23  ;;  %v557_v29 = vadd.s32 1, %v1407_v20  ;;  %v457_v32 = vshrl.u32 %v456_v22, 5 }
  0xbd   :  { %v1930_v36 = vshrl.u32 %v353_v23, 5  ;;  %v1947_v12 = vadd.s32 1, %v1411_v33 }
  0xbe   :  { %v459_v30 = vsub.s32 32, %v458_v26  ;;  %vm558_vm15 = vcmp.gt.s32.totalorder %v557_v29, 0  ;;  %v461_v38 = vshll.u32 %v1749_v37, %v458_v26  ;;  %v356_v42 = vsub.s32 32, %v1923_v27 }
  0xbf   :  { %v464_v43 = vshll.u32 %v1750_v39, %v458_v26  ;;  %v467_v45 = vshll.u32 %v1751_v44, %v458_v26  ;;  %v470_v47 = vshll.u32 %v1752_v46, %v458_v26  ;;  %v1942_v53 = vsel %vm558_vm15, %v557_v29, 0 }
  0xc0   :  { %v462_v41 = vshrl.u32 %v1750_v39, %v459_v30  ;;  %v465_v49 = vshrl.u32 %v1751_v44, %v459_v30  ;;  %v468_v50 = vshrl.u32 %v1752_v46, %v459_v30  ;;  %v471_v52 = vshrl.u32 %v1753_v51, %v459_v30 }
  0xc1   :  { %v460_v54 = vshrl.u32 %v1749_v37, %v459_v30  ;;  %v473_v55 = vshll.u32 %v1753_v51, %v458_v26  ;;  %v474_v57 = vshrl.u32 %v1754_v56, %v459_v30  ;;  %vm476_vm1 = vcmp.lt.s32.totalorder %v457_v32, 1 }
  0xc2   :  { %v463_v48 = vor.u32 %v462_v41, %v461_v38  ;;  %v466_v58 = vor.u32 %v465_v49, %v464_v43  ;;  %v469_v59 = vor.u32 %v468_v50, %v467_v45  ;;  %v472_v60 = vor.u32 %v471_v52, %v470_v47 }
  0xc3   :  { %v475_v63 = vor.u32 %v474_v57, %v473_v55  ;;  %vm477_vm2 = vcmp.lt.s32.totalorder %v457_v32, 2  ;;  %vm478_vm3 = vcmp.lt.s32.totalorder %v457_v32, 3  ;;  %vm479_vm4 = vcmp.lt.s32.totalorder %v457_v32, 4 }
  0xc4   :  { %v480_v0 = vsel %vm476_vm1, %v460_v54, %v463_v48  ;;  %v481_v1 = vsel %vm479_vm4, %v469_v59, 2102212464  ;;  %v484_v2 = vsel %vm476_vm1, %v463_v48, %v466_v58  ;;  %v485_v3 = vsel %vm479_vm4, %v472_v60, 920167782 }
  0xc5   :  { %v482_v4 = vsel %vm478_vm3, %v466_v58, %v481_v1  ;;  %v486_v7 = vsel %vm478_vm3, %v469_v59, %v485_v3  ;;  %v488_v8 = vsel %vm476_vm1, %v466_v58, %v469_v59  ;;  %v489_v11 = vsel %vm479_vm4, %v475_v63, 1326507024 }
  0xc6   :  { %v1950_v13 = vand.u32 31, %v1942_v53  ;;  %v487_v14 = vsel %vm477_vm2, %v484_v2, %v486_v7  ;;  %v490_v15 = vsel %vm478_vm3, %v472_v60, %v489_v11  ;;  %v483_v16 = vsel %vm477_vm2, %v480_v0, %v482_v4 }
  0xc7   :  { %v491_v17 = vsel %vm477_vm2, %v488_v8, %v490_v15  ;;  %v1956_v18 = vmul.u32.u64.low %v1926_v34, %v487_v14  ;;  %v1957_v19 = vmul.u32.u64.high %v1926_v34, %v487_v14, %v1956_v18  ;;  %v358_v22 = vshll.u32 %v1749_v37, %v1923_v27 }
  0xc8   :  { %v1961_v20 = vmul.u32.u64.low %v1926_v34, %v491_v17  ;;  %v1962_v21 = vmul.u32.u64.high %v1926_v34, %v491_v17, %v1961_v20  ;;  %v359_v23 = vshrl.u32 %v1750_v39, %v356_v42  ;;  %v361_v24 = vshll.u32 %v1750_v39, %v1923_v27 }
  0xc9   :  { %v362_v25 = vshrl.u32 %v1751_v44, %v356_v42  ;;  %v364_v26 = vshll.u32 %v1751_v44, %v1923_v27  ;;  %v365_v29 = vshrl.u32 %v1752_v46, %v356_v42  ;;  %v367_v32 = vshll.u32 %v1752_v46, %v1923_v27 }
  0xca   :  { %v360_v30 = vor.u32 %v359_v23, %v358_v22  ;;  %v368_v33 = vshrl.u32 %v1753_v51, %v356_v42  ;;  %v370_v38 = vshll.u32 %v1753_v51, %v1923_v27  ;;  %v502_v41 = vadd.s32 1, %v1957_v19 }
  0xcb   :  { %v363_v43 = vor.u32 %v362_v25, %v361_v24  ;;  %v366_v45 = vor.u32 %v365_v29, %v364_v26  ;;  %v371_v47 = vshrl.u32 %v1754_v56, %v356_v42  ;;  %v562_v48 = vsub.s32 32, %v1950_v13 }
  0xcc   :  { %v499_v49 = vmul.u32 %v1926_v34, %v483_v16  ;;  %vm501_vm5 = vc.u32 %v1962_v21, %v1956_v18  ;;  %v369_v50 = vor.u32 %v368_v33, %v367_v32  ;;  %v357_v54 = vshrl.u32 %v1749_v37, %v356_v42 }
  0xcd   :  { %v503_v52 = vsel %vm501_vm5, %v502_v41, %v1957_v19  ;;  %v372_v55 = vor.u32 %v371_v47, %v370_v38  ;;  %vm373_vm6 = vcmp.lt.s32.totalorder %v1930_v36, 1  ;;  %vm375_vm7 = vcmp.lt.s32.totalorder %v1930_v36, 3 }
  0xce   :  { %v504_v27 = vadd.s32 %v503_v52, %v499_v49  ;;  %vm376_vm8 = vcmp.lt.s32.totalorder %v1930_v36, 4  ;;  %v381_v57 = vsel %vm373_vm6, %v360_v30, %v363_v43  ;;  %v385_v34 = vsel %vm373_vm6, %v363_v43, %v366_v45 }
  0xcf   :  { %v378_v58 = vsel %vm376_vm8, %v366_v45, 2102212464  ;;  %v382_v59 = vsel %vm376_vm8, %v369_v50, 920167782  ;;  %v386_v60 = vsel %vm376_vm8, %v372_v55, 1326507024  ;;  %v377_v2 = vsel %vm373_vm6, %v357_v54, %v360_v30 }
  0xd0   :  { %v505_v63 = vadd.s32 536870912, %v504_v27  ;;  %vm374_vm9 = vcmp.lt.s32.totalorder %v1930_v36, 2  ;;  %v383_v0 = vsel %vm375_vm7, %v366_v45, %v382_v59  ;;  %v387_v1 = vsel %vm375_vm7, %v369_v50, %v386_v60 }
  0xd1   :  { %v379_v42 = vsel %vm375_vm7, %v363_v43, %v378_v58  ;;  %v384_v3 = vsel %vm374_vm9, %v381_v57, %v383_v0  ;;  %v388_v4 = vsel %vm374_vm9, %v385_v34, %v387_v1  ;;  %v554_v14 = vand.u32 8388607, %v547_v31 }
  0xd2   :  { %v1990_v7 = vshrl.u32 %v505_v63, 30  ;;  %v1993_v8 = vmul.u32.u64.low %v1928_v35, %v388_v4  ;;  %v1994_v11 = vmul.u32.u64.high %v1928_v35, %v388_v4, %v1993_v8  ;;  %v564_v36 = vshll.u32 %v1749_v37, %v1950_v13 }
  0xd3   :  { %v1999_v15 = vmul.u32.u64.low %v1928_v35, %v384_v3  ;;  %v2000_v16 = vmul.u32.u64.high %v1928_v35, %v384_v3, %v1999_v15  ;;  %v565_v17 = vshrl.u32 %v1750_v39, %v562_v48  ;;  %vm661_vm10 = vcmp.gt.s32.totalorder %v1947_v12, 0 }
  0xd4   :  { %v507_v19 = vshll.u32 %v1990_v7, 30  ;;  %v380_v20 = vsel %vm374_vm9, %v377_v2, %v379_v42  ;;  %v568_v22 = vshrl.u32 %v1751_v44, %v562_v48  ;;  %v567_v24 = vshll.u32 %v1750_v39, %v1950_v13 }
  0xd5   :  { %v566_v23 = vor.u32 %v565_v17, %v564_v36  ;;  %v570_v25 = vshll.u32 %v1751_v44, %v1950_v13  ;;  %v571_v26 = vshrl.u32 %v1752_v46, %v562_v48  ;;  %v560_v29 = vshrl.u32 %v1942_v53, 5 }
  0xd6   :  { %v508_v30 = vsub.s32 %v504_v27, %v507_v19  ;;  %vm398_vm11 = vc.u32 %v1994_v11, %v1999_v15  ;;  %v399_v32 = vadd.s32 1, %v2000_v16  ;;  %v555_v33 = vor.u32 8388608, %v554_v14 }
  0xd7   :  { %v569_v38 = vor.u32 %v568_v22, %v567_v24  ;;  %v572_v41 = vor.u32 %v571_v26, %v570_v25  ;;  %v662_v43 = vsel %vm661_vm10, %v1947_v12, 0  ;;  %v396_v47 = vmul.u32 %v1928_v35, %v380_v20 }
  0xd8   :  { %v510_v45 = vsub.s32 0, %v508_v30  ;;  %v574_v49 = vshrl.u32 %v1753_v51, %v562_v48  ;;  %v400_v53 = vsel %vm398_vm11, %v399_v32, %v2000_v16  ;;  %v573_v50 = vshll.u32 %v1752_v46, %v1950_v13 }
  0xd9   :  { %v576_v52 = vshll.u32 %v1753_v51, %v1950_v13  ;;  %v577_v54 = vshrl.u32 %v1754_v56, %v562_v48  ;;  %v563_v27 = vshrl.u32 %v1749_v37, %v562_v48  ;;  %vm579_vm12 = vcmp.lt.s32.totalorder %v560_v29, 1 }
  0xda   :  { %v1404_v55 = vmin.u32 %v510_v45, %v508_v30  ;;  %vm580_vm13 = vcmp.lt.s32.totalorder %v560_v29, 2  ;;  %v401_v12 = vadd.s32 %v400_v53, %v396_v47  ;;  %v575_v57 = vor.u32 %v574_v49, %v573_v50 }
  0xdb   :  { %v578_v35 = vor.u32 %v577_v54, %v576_v52  ;;  %vm581_vm14 = vcmp.lt.s32.totalorder %v560_v29, 3  ;;  %vm582_vm15 = vcmp.lt.s32.totalorder %v560_v29, 4  ;;  %v583_v59 = vsel %vm579_vm12, %v563_v27, %v566_v23 }
  0xdc   :  { %v512_v58 = vclz %v1404_v55  ;;  %v587_v34 = vsel %vm579_vm12, %v566_v23, %v569_v38  ;;  %v402_v60 = vadd.s32 536870912, %v401_v12  ;;  %v584_v63 = vsel %vm582_vm15, %v572_v41, 2102212464 }
  0xdd   :  { %v588_v0 = vsel %vm582_vm15, %v575_v57, 920167782  ;;  %v591_v1 = vsel %vm579_vm12, %v569_v38, %v572_v41  ;;  %v585_v2 = vsel %vm581_vm14, %v569_v38, %v584_v63  ;;  %v592_v48 = vsel %vm582_vm15, %v578_v35, 1326507024 }
  0xde   :  { %v1405_v13 = vadd.s32 4294967294, %v512_v58  ;;  %v589_v42 = vsel %vm581_vm14, %v572_v41, %v588_v0  ;;  %v2032_v3 = vshrl.u32 %v402_v60, 30  ;;  %v586_v4 = vsel %vm580_vm13, %v583_v59, %v585_v2 }
  0xdf   :  { %v590_v8 = vsel %vm580_vm13, %v587_v34, %v589_v42  ;;  %v593_v14 = vsel %vm581_vm14, %v575_v57, %v592_v48  ;;  %v595_v19 = vshll.u32 %v555_v33, 8  ;;  %v664_v20 = vand.u32 31, %v662_v43 }
  0xe0   :  { %vm1406_vm1 = vcmp.lt.s32.totalorder %v1405_v13, 0  ;;  %v594_v16 = vsel %vm580_vm13, %v591_v1, %v593_v14  ;;  %v404_v17 = vshll.u32 %v2032_v3, 30  ;;  %v500_v22 = vadd.s32 %v1956_v18, %v1962_v21 }
  0xe1   :  { %v515_v36 = vsel %vm1406_vm1, 0, %v1405_v13  ;;  %v530_v25 = vsub.s32 4, %v1990_v7  ;;  %v2044_v32 = vmul.u32.u64.low %v595_v19, %v594_v16  ;;  %v2045_v38 = vmul.u32.u64.high %v595_v19, %v594_v16, %v2044_v32 }
  0xe2   :  { %v516_v23 = vsub.s32 32, %v515_v36  ;;  %v520_v24 = vsub.s32 4294967266, %v515_v36  ;;  %v2042_v26 = vsub.s32 %v401_v12, %v404_v17  ;;  %vm446_vm2 = vcmp.lt.s32.totalorder %v1904_v61, 0 }
  0xe3   :  { %v517_v29 = vshll.u32 %v508_v30, %v515_v36  ;;  %vm2050_vm3 = vcmp.le.f32.partialorder %v444_v5, 0.7853982  ;;  %v2055_v21 = vmul.u32.u64.low %v595_v19, %v590_v8  ;;  %v2056_v47 = vmul.u32.u64.high %v595_v19, %v590_v8, %v2055_v21 }
  0xe4   :  { %v518_v41 = vshrl.u32 %v500_v22, %v516_v23  ;;  %v521_v45 = vadd.s32 127, %v520_v24  ;;  %v407_v18 = vsub.s32 0, %v2042_v26  ;;  %v2058_v49 = vshrl.u32 %v662_v43, 5 }
  0xe5   :  { %v665_v53 = vsub.s32 32, %v664_v20  ;;  %v2063_v30 = vsel %vm446_vm2, %v530_v25, %v1990_v7  ;;  %v397_v5 = vadd.s32 %v1999_v15, %v1994_v11  ;;  %v650_v55 = vand.u32 2147483647, %v1913_v9 }
  0xe6   :  { %v519_v50 = vor.u32 %v518_v41, %v517_v29  ;;  %v522_v52 = vshll.u32 %v521_v45, 23  ;;  %v1400_v54 = vmin.u32 %v407_v18, %v2042_v26  ;;  %v602_v12 = vmul.u32 %v595_v19, %v586_v4 }
  0xe7   :  { %v2070_v43 = vadd.s32 %v2055_v21, %v2045_v38  ;;  %vm604_vm4 = vc.u32 %v2045_v38, %v2055_v21  ;;  %v605_v58 = vadd.s32 1, %v2056_v47  ;;  %v667_v7 = vshll.u32 %v1749_v37, %v664_v20 }
  0xe8   :  { %v523_v27 = vor.u32 4788187, %v522_v52  ;;  %v526_v57 = vcvt.s32.f32 %v519_v50  ;;  %v409_v35 = vclz %v1400_v54  ;;  %v668_v11 = vshrl.u32 %v1750_v39, %v665_v53 }
  0xe9   :  { %v670_v15 = vshll.u32 %v1750_v39, %v664_v20  ;;  %v671_v34 = vshrl.u32 %v1751_v44, %v665_v53  ;;  %v606_v63 = vsel %vm604_vm4, %v605_v58, %v2056_v47  ;;  %v673_v0 = vshll.u32 %v1751_v44, %v664_v20  ;;  %v1620_v58 = vld [vmem:[%s2370_s5 + $0x10] sm:$0xff]  }
  0xea   :  { %v524_v59 = vand.u32 2147483647, %v523_v27  ;;  %v1401_v60 = vadd.s32 4294967294, %v409_v35  ;;  %v674_v1 = vshrl.u32 %v1752_v46, %v665_v53  ;;  %v607_v2 = vadd.s32 %v606_v63, %v602_v12 }
  0xeb   :  { %v669_v42 = vor.u32 %v668_v11, %v667_v7  ;;  %v672_v48 = vor.u32 %v671_v34, %v670_v15  ;;  %v676_v8 = vshll.u32 %v1752_v46, %v664_v20  ;;  %v677_v14 = vshrl.u32 %v1753_v51, %v665_v53 }
  0xec   :  { %v527_v13 = vmul.f32 %v526_v57, %v524_v59  ;;  %vm1402_vm5 = vcmp.lt.s32.totalorder %v1401_v60, 0  ;;  %v675_v4 = vor.u32 %v674_v1, %v673_v0  ;;  %v533_v16 = vsel %vm2050_vm3, 0, %v2063_v30 }
  0xed   :  { %v412_v36 = vsel %vm1402_vm5, 0, %v1401_v60  ;;  %v608_v17 = vadd.s32 536870912, %v607_v2  ;;  %v657_v22 = vand.u32 8388607, %v650_v55  ;;  %v678_v23 = vor.u32 %v677_v14, %v676_v8 }
  0xee   :  { %v528_v39 = vxor.u32 2147483648, %v527_v13  ;;  %v413_v44 = vsub.s32 32, %v412_v36  ;;  %v417_v19 = vsub.s32 4294967266, %v412_v36  ;;  %v679_v46 = vshll.u32 %v1753_v51, %v664_v20 }
  0xef   :  { %v2090_v25 = vshrl.u32 %v608_v17, 30  ;;  %v680_v32 = vshrl.u32 %v1754_v56, %v665_v53  ;;  %v414_v29 = vshll.u32 %v2042_v26, %v412_v36  ;;  %v666_v21 = vshrl.u32 %v1749_v37, %v665_v53 }
  0xf0   :  { %v529_v24 = vsel %vm446_vm2, %v528_v39, %v527_v13  ;;  %v415_v41 = vshrl.u32 %v397_v5, %v413_v44  ;;  %v418_v45 = vadd.s32 127, %v417_v19  ;;  %vm682_vm6 = vcmp.lt.s32.totalorder %v2058_v49, 1 }
  0xf1   :  { %v532_v38 = vsel %vm2050_vm3, %v1904_v61, %v529_v24  ;;  %v610_v18 = vshll.u32 %v2090_v25, 30  ;;  %v681_v47 = vor.u32 %v680_v32, %v679_v46  ;;  %v658_v56 = vor.u32 8388608, %v657_v22  ;;  %v759_v46 = vpop.permute.xlu1 %758 }
  0xf2   :  { %1626 = vcosq.f32 %v532_v38  ;;  %v416_v50 = vor.u32 %v415_v41, %v414_v29  ;;  %v419_v52 = vshll.u32 %v418_v45, 23  ;;  %vm685_vm7 = vcmp.lt.s32.totalorder %v2058_v49, 4 }
  0xf3   :  { %1628 = vsinq.f32 %v532_v38  ;;  %v2101_v51 = vsub.s32 %v607_v2, %v610_v18  ;;  %v686_v20 = vsel %vm682_vm6, %v666_v21, %v669_v42  ;;  %vm683_vm8 = vcmp.lt.s32.totalorder %v2058_v49, 2 }
  0xf4   :  { %v420_v26 = vor.u32 4788187, %v419_v52  ;;  %vm684_vm9 = vcmp.lt.s32.totalorder %v2058_v49, 3  ;;  %v687_v37 = vsel %vm685_vm7, %v675_v4, 2102212464  ;;  %v423_v33 = vcvt.s32.f32 %v416_v50 }
  0xf5   :  { %v613_v53 = vsub.s32 0, %v2101_v51  ;;  %v688_v30 = vsel %vm684_vm9, %v672_v48, %v687_v37  ;;  %v690_v5 = vsel %vm682_vm6, %v669_v42, %v672_v48  ;;  %v691_v12 = vsel %vm685_vm7, %v678_v23, 920167782  ;;  %v1616_v37 = vld [vmem:[%s2371_s6] sm:$0xff]  }
  0xf6   :  { %v421_v54 = vand.u32 2147483647, %v420_v26  ;;  %v689_v27 = vsel %vm683_vm8, %v686_v20, %v688_v30  ;;  %v694_v57 = vsel %vm682_vm6, %v672_v48, %v675_v4  ;;  %v537_v35 = vand.u32 3, %v533_v16  ;;  %1525 = vmatprep.subr.bf16.mxu0 %v1616_v37 }
  0xf7   :  { %vm2123_vm10 = vcmp.le.f32.partialorder %v341_v6, 0.7853982  ;;  %vm343_vm11 = vcmp.lt.s32.totalorder %v1906_v62, 0  ;;  %v1408_v7 = vmin.u32 %v613_v53, %v2101_v51  ;;  %vm536_vm12 = vweird.f32 %v1904_v61  ;;  %v1617_v61 = vld [vmem:[%s2371_s6 + $0x8] sm:$0xff]   ;;  %1526 = vmatpush3.bf16.msra.mxu0 %v1616_v37 }
  0xf8   :  { %v424_v59 = vmul.f32 %v423_v33, %v421_v54  ;;  %v692_v11 = vsel %vm684_vm9, %v675_v4, %v691_v12  ;;  %v695_v15 = vsel %vm685_vm7, %v681_v47, 1326507024  ;;  %v698_v34 = vshll.u32 %v658_v56, 8  ;;  %v1618_v33 = vld [vmem:[%s2370_s5] sm:$0xff]   ;;  %v1619_v53 = vld [vmem:[%s2370_s5 + $0x8] sm:$0xff]   ;;  %1527 = vmatprep.subr.bf16.mxu0 %v1617_v61 }
  0xf9   :  { %v427_v60 = vsub.s32 4, %v2032_v3  ;;  %v615_v6 = vclz %v1408_v7  ;;  %v693_v63 = vsel %vm683_vm8, %v690_v5, %v692_v11  ;;  %v696_v0 = vsel %vm684_vm9, %v678_v23, %v695_v15  ;;  %1505 = vmatprep.subr.bf16.mxu1 %v1618_v33 }
  0xfa   :  { %v425_v1 = vxor.u32 2147483648, %v424_v59  ;;  %v697_v13 = vsel %vm683_vm8, %v694_v57, %v696_v0  ;;  %v2141_v2 = vmul.u32.u64.low %v698_v34, %v693_v63  ;;  %v2142_v42 = vmul.u32.u64.high %v698_v34, %v693_v63, %v2141_v2  ;;  %1506 = vmatpush3.bf16.msra.mxu1 %v1618_v33  ;;  %v755_v63 = vpop.permute.xlu0 %754 }
  0xfb   :  { %vm538_vm13 = vcmp.lt.s32.totalorder %v537_v35, 2  ;;  %v1409_v4 = vadd.s32 4294967294, %v615_v6  ;;  %v2144_v8 = vmul.u32.u64.low %v698_v34, %v697_v13  ;;  %v2145_v14 = vmul.u32.u64.high %v698_v34, %v697_v13, %v2144_v8  ;;  %1507 = vmatprep.subr.bf16.mxu1 %v1619_v53  ;;  %1528 = vmatpush3.bf16.msra.mxu0 %v1617_v61 }
  0xfc   :  { %v1627_v48 = vpop.eup %1626  ;;  %vm539_vm14 = vcmp.eq.s32.totalorder %v537_v35, 0  ;;  %vm542_vm15 = vcmp.eq.s32.totalorder %v537_v35, 2  ;;  %v426_v36 = vsel %vm343_vm11, %v425_v1, %v424_v59  ;;  %v428_v49 = vsel %vm343_vm11, %v427_v60, %v2032_v3 }
  0xfd   :  { %v1629_v39 = vpop.eup %1628  ;;  %v543_v16 = vxor.u32 2147483648, %v1627_v48  ;;  %v429_v44 = vsel %vm2123_vm10, %v1906_v62, %v426_v36  ;;  %vm1410_vm1 = vcmp.lt.s32.totalorder %v1409_v4, 0  ;;  %v708_v23 = vadd.s32 1, %v2142_v42 }
  0xfe   :  { %v540_v17 = vxor.u32 2147483648, %v1629_v39  ;;  %1630 = vcosq.f32 %v429_v44  ;;  %v618_v22 = vsel %vm1410_vm1, 0, %v1409_v4  ;;  %v705_v38 = vmul.u32 %v698_v34, %v689_v27  ;;  %1508 = vmatpush3.bf16.msra.mxu1 %v1619_v53 }
  0xff   :  { %v544_v19 = vsel %vm542_vm15, %v543_v16, %v1629_v39  ;;  %1632 = vsinq.f32 %v429_v44  ;;  %v619_v32 = vsub.s32 32, %v618_v22  ;;  %v623_v41 = vsub.s32 4294967266, %v618_v22  ;;  %1509 = vmatprep.subr.bf16.mxu1 %v1620_v58 }
 0x100   :  { %v541_v24 = vsel %vm539_vm14, %v1627_v48, %v540_v17  ;;  %v2158_v3 = vadd.s32 %v2141_v2, %v2145_v14  ;;  %vm707_vm2 = vc.u32 %v2145_v14, %v2141_v2  ;;  %v620_v18 = vshll.u32 %v2101_v51, %v618_v22 }
 0x101   :  { %v545_v29 = vsel %vm538_vm13, %v541_v24, %v544_v19  ;;  %v621_v21 = vshrl.u32 %v2070_v43, %v619_v32  ;;  %v709_v47 = vsel %vm707_vm2, %v708_v23, %v2142_v42  ;;  %v624_v52 = vadd.s32 127, %v623_v41 }
 0x102   :  { %v546_v45 = vsel %vm536_vm12, nan, %v545_v29  ;;  %v710_v56 = vadd.s32 %v709_v47, %v705_v38  ;;  %v430_v20 = vsel %vm2123_vm10, 0, %v428_v49  ;;  %vm433_vm6 = vweird.f32 %v1906_v62  ;;  %1510 = vmatpush3.bf16.msra.mxu1 %v1620_v58  ;;  %v1622_v58 = vld [vmem:[%s2370_s5 + $0x20] sm:$0xff]  }
 0x103   :  { %v770_v50 = vmul.f32 %v759_v46, %v546_v45  ;;  %v622_v26 = vor.u32 %v621_v21, %v620_v18  ;;  %v625_v43 = vshll.u32 %v624_v52, 23  ;;  %v434_v30 = vand.u32 3, %v430_v20 }
 0x104   :  { %v711_v51 = vadd.s32 536870912, %v710_v56  ;;  %vm2190_vm7 = vcmp.le.f32.partialorder %v547_v31, 0.7853982  ;;  %vm549_vm8 = vcmp.lt.s32.totalorder %v1915_v10, 0  ;;  %v633_v4 = vsub.s32 4, %v2090_v25 }
 0x105   :  { %821 = vrot.lane.b32.xlu0 %v770_v50, %s1755_s17  ;;  %v626_v5 = vor.u32 4788187, %v625_v43  ;;  %v629_v57 = vcvt.s32.f32 %v622_v26  ;;  %vm439_vm3 = vcmp.eq.s32.totalorder %v434_v30, 2  ;;  %vm436_vm4 = vcmp.eq.s32.totalorder %v434_v30, 0 }
 0x106   :  { %v2181_v54 = vshrl.u32 %v711_v51, 30  ;;  %vm435_vm5 = vcmp.lt.s32.totalorder %v434_v30, 2  ;;  %v634_v31 = vsel %vm549_vm8, %v633_v4, %v2090_v25  ;;  %vm652_vm13 = vcmp.lt.s32.totalorder %v1913_v9, 0 }
 0x107   :  { %v627_v12 = vand.u32 2147483647, %v626_v5  ;;  %v636_v36 = vsel %vm2190_vm7, 0, %v634_v31  ;;  %vm651_vm14 = vcmp.le.f32.partialorder %v650_v55, 0.7853982 }
 0x108   :  { %v1631_v27 = vpop.eup %1630  ;;  %v713_v35 = vshll.u32 %v2181_v54, 30  ;;  %v640_v19 = vand.u32 3, %v636_v36  ;;  %v736_v26 = vsub.s32 4, %v2181_v54 }
 0x109   :  { %v1633_v7 = vpop.eup %1632  ;;  %v440_v59 = vxor.u32 2147483648, %v1631_v27  ;;  %v630_v15 = vmul.f32 %v629_v57, %v627_v12  ;;  %v1621_v57 = vld [vmem:[%s2370_s5 + $0x18] sm:$0xff]  }
 0x10a   :  { %v437_v11 = vxor.u32 2147483648, %v1633_v7  ;;  %v714_v34 = vsub.s32 %v710_v56, %v713_v35  ;;  %vm645_vm10 = vcmp.eq.s32.totalorder %v640_v19, 2  ;;  %vm642_vm11 = vcmp.eq.s32.totalorder %v640_v19, 0  ;;  %1511 = vmatprep.subr.bf16.mxu1 %v1621_v57 }
 0x10b   :  { %v441_v60 = vsel %vm439_vm3, %v440_v59, %v1633_v7  ;;  %v631_v0 = vxor.u32 2147483648, %v630_v15  ;;  %vm641_vm12 = vcmp.lt.s32.totalorder %v640_v19, 2  ;;  %v737_v61 = vsel %vm652_vm13, %v736_v26, %v2181_v54  ;;  %1512 = vmatpush3.bf16.msra.mxu1 %v1621_v57 }
 0x10c   :  { %v438_v6 = vsel %vm436_vm4, %v1631_v27, %v437_v11  ;;  %v716_v1 = vsub.s32 0, %v714_v34  ;;  %v739_v43 = vsel %vm651_vm14, 0, %v737_v61  ;;  %1513 = vmatprep.subr.bf16.mxu1 %v1622_v58  ;;  %v1623_v11 = vld [vmem:[%s2370_s5 + $0x28] sm:$0xff]   ;;  %vm742_vm3 = vweird.f32 %v1913_v9 }
 0x10d   :  { %v442_v13 = vsel %vm435_vm5, %v438_v6, %v441_v60  ;;  %v632_v48 = vsel %vm549_vm8, %v631_v0, %v630_v15  ;;  %v743_v51 = vand.u32 3, %v739_v43  ;;  %v1624_v15 = vld [vmem:[%s2370_s5 + $0x30] sm:$0xff]   ;;  %v1625_v6 = vld [vmem:[%s2370_s5 + $0x38] sm:$0xff]   ;;  %vm639_vm4 = vweird.f32 %v1915_v10  ;;  %v767_v0 = vpop.permute.xlu0 %766 }
 0x10e   :  { %v443_v42 = vsel %vm433_vm6, nan, %v442_v13  ;;  %v1412_v8 = vmin.u32 %v716_v1, %v714_v34  ;;  %v635_v39 = vsel %vm2190_vm7, %v1915_v10, %v632_v48  ;;  %v763_v13 = vpop.permute.xlu1 %762  ;;  %vm793_vm5 = vcmask 523520  }
 0x10f   :  { %v769_v14 = vmul.f32 %v755_v63, %v443_v42  ;;  %1634 = vcosq.f32 %v635_v39  ;;  %vm748_vm15 = vcmp.eq.s32.totalorder %v743_v51, 2  ;;  %vm745_vm1 = vcmp.eq.s32.totalorder %v743_v51, 0  ;;  %1514 = vmatpush3.bf16.msra.mxu1 %v1622_v58 }
 0x110   :  { %v718_v62 = vclz %v1412_v8  ;;  %1636 = vsinq.f32 %v635_v39  ;;  %vm744_vm2 = vcmp.lt.s32.totalorder %v743_v51, 2  ;;  %1515 = vmatprep.subr.bf16.mxu1 %v1623_v11  ;;  %vm810_vm6 = vcmask 654848  }
 0x111   :  { %819 = vrot.lane.b32.xlu1 %v769_v14, %s1755_s17  ;;  %v2246_v14 = vld [vmem:[%s2372_s7] ss:$0 sm:$0xff]  ;;  %vm831_vm7 = vcmask 917120   ;;  %vm836_vm8 = vcmask 1048448   ;;  %s1758_s7 = smov 64  }
 0x112   :  { %v1413_v16 = vadd.s32 4294967294, %v718_v62  ;;  %v799_v36 = vpop.permute.xlu1 %798 }
 0x113   :  { %1516 = vmatpush3.bf16.msra.mxu1 %v1623_v11 }
 0x114   :  { %vm1414_vm9 = vcmp.lt.s32.totalorder %v1413_v16, 0  ;;  %1517 = vmatprep.subr.bf16.mxu1 %v1624_v15 }
 0x115   :  { %v721_v17 = vsel %vm1414_vm9, 0, %v1413_v16  ;;  %v801_v16 = vpop.permute.xlu0 %800 }
 0x116   :  { %v722_v49 = vsub.s32 32, %v721_v17  ;;  %v726_v44 = vsub.s32 4294967266, %v721_v17  ;;  %v723_v22 = vshll.u32 %v714_v34, %v721_v17 }
 0x117   :  { %1518 = vmatpush3.bf16.msra.mxu1 %v1624_v15 }
 0x118   :  { %v724_v23 = vshrl.u32 %v2158_v3, %v722_v49  ;;  %v727_v24 = vadd.s32 127, %v726_v44  ;;  %1519 = vmatprep.subr.bf16.mxu1 %v1625_v6  ;;  %v803_v49 = vpop.permute.xlu1 %802 }
 0x119   :  { %v1635_v46 = vpop.eup %1634  ;;  %v805_v17 = vpop.permute.xlu0 %804 }
 0x11a   :  { %v725_v32 = vor.u32 %v724_v23, %v723_v22  ;;  %v728_v38 = vshll.u32 %v727_v24, 23  ;;  %v1637_v29 = vpop.eup %1636  ;;  %v646_v41 = vxor.u32 2147483648, %v1635_v46 }
 0x11b   :  { %v643_v45 = vxor.u32 2147483648, %v1637_v29  ;;  %1520 = vmatpush3.bf16.msra.mxu1 %v1625_v6 }
 0x11c   :  { %v729_v25 = vor.u32 4788187, %v728_v38  ;;  %v647_v18 = vsel %vm645_vm10, %v646_v41, %v1637_v29  ;;  %v732_v50 = vcvt.s32.f32 %v725_v32 }
 0x11d   :  { %v644_v21 = vsel %vm642_vm11, %v1635_v46, %v643_v45 }
 0x11e   :  { %v730_v47 = vand.u32 2147483647, %v729_v25  ;;  %v648_v52 = vsel %vm641_vm12, %v644_v21, %v647_v18 }
 0x11f   :  { %v649_v2 = vsel %vm639_vm4, nan, %v648_v52 }
 0x120   :  { %v733_v56 = vmul.f32 %v732_v50, %v730_v47  ;;  %v771_v4 = vmul.f32 %v763_v13, %v649_v2 }
 0x122   :  { %v734_v20 = vxor.u32 2147483648, %v733_v56 }
 0x124   :  { %v735_v3 = vsel %vm652_vm13, %v734_v20, %v733_v56 }
 0x125   :  { %v738_v37 = vsel %vm651_vm14, %v1913_v9, %v735_v3 }
 0x126   :  { %1638 = vcosq.f32 %v738_v37 }
 0x127   :  { %1640 = vsinq.f32 %v738_v37 }
 0x130   :  { %v1639_v33 = vpop.eup %1638 }
 0x131   :  { %v1641_v53 = vpop.eup %1640  ;;  %v749_v30 = vxor.u32 2147483648, %v1639_v33 }
 0x132   :  { %v746_v5 = vxor.u32 2147483648, %v1641_v53 }
 0x133   :  { %v750_v27 = vsel %vm748_vm15, %v749_v30, %v1641_v53 }
 0x134   :  { %v747_v55 = vsel %vm745_vm1, %v1639_v33, %v746_v5 }
 0x135   :  { %v751_v12 = vsel %vm744_vm2, %v747_v55, %v750_v27 }
 0x136   :  { %v752_v63 = vsel %vm742_vm3, nan, %v751_v12 }
 0x137   :  { %v772_v48 = vmul.f32 %v767_v0, %v752_v63 }
 0x16f   :  { %v1489_v35 = vpop.f32.mrb[0].mxu0 }
 0x170   :  { %774 = vst.msk [vmem:[#allocation2 + $0x8] sm:$0xff] %vm138_vm0, %v1489_v35  ;;  %v241_v54 = vpop.f32.mrb[1].mxu0 }
 0x171   :  { %773 = vst.msk [vmem:[#allocation2] sm:$0xff] %vm138_vm0, %v241_v54 }
 0x173   :  { %v1492_v7 = vpop.f32.mrb[2].mxu0 }
 0x174   :  { %776 = vst.msk [vmem:[#allocation2 + $0x18] sm:$0xff] %vm138_vm0, %v1492_v7  ;;  %v251_v59 = vpop.f32.mrb[3].mxu0 }
 0x175   :  { %775 = vst.msk [vmem:[#allocation2 + $0x10] sm:$0xff] %vm138_vm0, %v251_v59 }
 0x177   :  { %v1495_v34 = vpop.f32.mrb[4].mxu0  ;;  %v822_v44 = vpop.permute.xlu0 %821 }
 0x178   :  { %783 = vrot.lane.b32.xlu0 %v1495_v34, %s1756_s11  ;;  %v261_v60 = vpop.f32.mrb[5].mxu0 }
 0x179   :  { %781 = vrot.lane.b32.xlu1 %v261_v60, %s1756_s11 }
 0x17b   :  { %v1498_v1 = vpop.f32.mrb[6].mxu0 }
 0x17c   :  { %787 = vrot.lane.b32.xlu0 %v1498_v1, %s1756_s11  ;;  %v271_v42 = vpop.f32.mrb[7].mxu0 }
 0x17d   :  { %785 = vrot.lane.b32.xlu1 %v271_v42, %s1756_s11 }
 0x17f   :  { %v2235_v8 = vpop.f32.mrb[8].mxu0 }
 0x180   :  { %825 = vrot.lane.b32.xlu0 %v772_v48, %s1755_s17  ;;  %v2238_v9 = vpop.f32.mrb[9].mxu0 }
 0x181   :  { %v960_v10 = vpack.c.bf16 %v2235_v8, %v2238_v9  ;;  %823 = vrot.lane.b32.xlu1 %v771_v4, %s1755_s17 }
 0x183   :  { %v2248_v39 = vpop.f32.mrb[10].mxu0  ;;  %1529 = vmatprep.mubr.msk.bf16.mxu0 %vm138_vm0, %v960_v10  ;;  %v820_v19 = vpop.permute.xlu1 %819 }
 0x184   :  { %v2251_v62 = vpop.f32.mrb[11].mxu0 }
 0x185   :  { %v961_v31 = vpack.c.bf16 %v2248_v39, %v2251_v62  ;;  %1076 = vrot.lane.b32.xlu1 %v2246_v14, %s1757_s13 }
 0x187   :  { %1530 = vmatmul.mubr.msk.bf16.vlgmr.msra.gmra.mrb[12].mxu0 %vm138_vm0, %v961_v31 }
 0x1ea   :  { %v784_v22 = vpop.permute.xlu0 %783 }
 0x1eb   :  { %795 = vst.msk [vmem:[#allocation2 + $0x8] sm:$0xff] %vm793_vm5, %v784_v22  ;;  %v782_v23 = vpop.permute.xlu1 %781 }
 0x1ec   :  { %812 = vst.msk [vmem:[#allocation2 + $0x8] sm:$0xff] %vm810_vm6, %v801_v16 }
 0x1ed   :  { %794 = vst.msk [vmem:[#allocation2] sm:$0xff] %vm793_vm5, %v782_v23 }
 0x1ee   :  { %811 = vst.msk [vmem:[#allocation2] sm:$0xff] %vm810_vm6, %v799_v36  ;;  %v788_v24 = vpop.permute.xlu0 %787 }
 0x1ef   :  { %833 = vst.msk [vmem:[#allocation2 + $0x8] sm:$0xff] %vm831_vm7, %v822_v44  ;;  %832 = vst.msk [vmem:[#allocation2] sm:$0xff] %vm831_vm7, %v820_v19  ;;  %v786_v46 = vpop.permute.xlu1 %785 }
 0x1f0   :  { %838 = vst.msk [vmem:[#allocation2 + $0x8] sm:$0xff] %vm836_vm8, %v1748_v28  ;;  %837 = vst.msk [vmem:[#allocation2] sm:$0xff] %vm836_vm8, %v1748_v28 }
 0x1f1   :  { %797 = vst.msk [vmem:[#allocation2 + $0x18] sm:$0xff] %vm793_vm5, %v788_v24  ;;  %796 = vst.msk [vmem:[#allocation2 + $0x10] sm:$0xff] %vm793_vm5, %v786_v46 }
 0x1f2   :  { %814 = vst.msk [vmem:[#allocation2 + $0x18] sm:$0xff] %vm810_vm6, %v805_v17  ;;  %813 = vst.msk [vmem:[#allocation2 + $0x10] sm:$0xff] %vm810_vm6, %v803_v49  ;;  %v826_v32 = vpop.permute.xlu0 %825 }
 0x1f3   :  { %835 = vst.msk [vmem:[#allocation2 + $0x18] sm:$0xff] %vm831_vm7, %v826_v32  ;;  %v824_v38 = vpop.permute.xlu1 %823 }
 0x1f4   :  { %840 = vst.msk [vmem:[#allocation2 + $0x18] sm:$0xff] %vm836_vm8, %v1748_v28 }
 0x1f5   :  { %834 = vst.msk [vmem:[#allocation2 + $0x10] sm:$0xff] %vm831_vm7, %v824_v38 }
 0x1f6   :  { %839 = vst.msk [vmem:[#allocation2 + $0x10] sm:$0xff] %vm836_vm8, %v1748_v28 }
 0x1f7   :  { %v842_v29 = vld [vmem:[#allocation2 + $0x8] sm:$0xff]  ;;  %v841_v41 = vld [vmem:[#allocation2] sm:$0xff]  ;;  %v1077_v47 = vpop.permute.xlu1 %1076 }
 0x1f8   :  { %v845_v45 = vpack.c.bf16 %v842_v29, %v841_v41 }
 0x1fa   :  { %1521 = vmatprep.mubr.bf16.mxu1 %v845_v45 }
 0x1fb   :  { %v844_v25 = vld [vmem:[#allocation2 + $0x18] sm:$0xff] }
 0x1fd   :  { %v843_v18 = vld [vmem:[#allocation2 + $0x10] sm:$0xff] }
 0x1fe   :  { %v846_v21 = vpack.c.bf16 %v844_v25, %v843_v18 }
 0x200   :  { %1522 = vmatmul.mubr.bf16.vlgmr.msra.gmra.mrb[0].mxu1 %v846_v21 }
 0x25a   :  { %v1531_v50 = vpop.f32.mrb[12].mxu0 }
 0x25b   :  { %v1018_v52 = vpop.f32.mrb[13].mxu0  ;;  %v1081_v37 = vadd.f32 %v1531_v50, %v1077_v47 }
 0x25c   :  { %v1079_v56 = vadd.f32 %v1077_v47, %v1018_v52  ;;  %v1532_v20 = vpop.f32.mrb[14].mxu0 }
 0x25d   :  { %v1021_v3 = vpop.f32.mrb[15].mxu0  ;;  %v1082_v61 = vadd.f32 %v1532_v20, %v1077_v47 }
 0x25e   :  { %v1080_v26 = vadd.f32 %v1077_v47, %v1021_v3  ;;  %1087 = vrot.lane.b32.xlu0 %v1079_v56, %s1758_s7 }
 0x260   :  { %1089 = vrot.lane.b32.xlu1 %v1080_v26, %s1758_s7 }
 0x262   :  { %1091 = vrot.lane.b32.xlu0 %v1081_v37, %s1758_s7 }
 0x264   :  { %1093 = vrot.lane.b32.xlu1 %v1082_v61, %s1758_s7 }
 0x2d0   :  { %v1088_v2 = vpop.permute.xlu0 %1087 }
 0x2d2   :  { %v1090_v48 = vpop.permute.xlu1 %1089 }
 0x2d3   :  { %v1523_v43 = vpop.f32.mrb[0].mxu1 }
 0x2d4   :  { %v1036_v51 = vadd.f32 %v1531_v50, %v1523_v43  ;;  %v945_v33 = vpop.f32.mrb[1].mxu1  ;;  %v1092_v17 = vpop.permute.xlu0 %1091  ;;  %v1074_v24 = vadd.f32 %v1523_v43, %v2246_v14 }
 0x2d5   :  { %v1034_v53 = vadd.f32 %v1018_v52, %v945_v33  ;;  %v1524_v30 = vpop.f32.mrb[2].mxu1  ;;  %v1072_v32 = vadd.f32 %v2246_v14, %v945_v33 }
 0x2d6   :  { %v1046_v5 = vadd.f32 %v2246_v14, %v1036_v51  ;;  %v1037_v27 = vadd.f32 %v1532_v20, %v1524_v30  ;;  %v948_v55 = vpop.f32.mrb[3].mxu1  ;;  %v1094_v44 = vpop.permute.xlu1 %1093  ;;  %v1075_v38 = vadd.f32 %v1524_v30, %v2246_v14 }
 0x2d7   :  { %v1044_v12 = vadd.f32 %v2246_v14, %v1034_v53  ;;  %v1035_v57 = vadd.f32 %v1021_v3, %v948_v55  ;;  %v1073_v45 = vadd.f32 %v2246_v14, %v948_v55 }
 0x2d8   :  { %v1430_v35 = vmul.f32 -1.442695, %v1046_v5  ;;  %v1047_v54 = vadd.f32 %v2246_v14, %v1037_v27 }
 0x2d9   :  { %v1428_v58 = vmul.f32 -1.442695, %v1044_v12  ;;  %v1045_v7 = vadd.f32 %v2246_v14, %v1035_v57 }
 0x2da   :  { %1642 = vpow2.f32 %v1430_v35  ;;  %v1431_v59 = vmul.f32 -1.442695, %v1047_v54 }
 0x2db   :  { %1644 = vpow2.f32 %v1428_v58  ;;  %v1429_v11 = vmul.f32 -1.442695, %v1045_v7 }
 0x2dc   :  { %1646 = vpow2.f32 %v1431_v59 }
 0x2dd   :  { %1648 = vpow2.f32 %v1429_v11  ;;  %v1432_v11 = vld [vmem:[%s2367_s2] ss:$0 sm:$0xff]  ;;  %s1759_s2 = smov [#allocation7]  }
 0x2de   :  { %vm1205_vm9 = vcmp.eq.s32.totalorder %v1432_v11, %v1884_v40  ;;  %s1359_s15 = sshll.u32 %s1759_s2, 4  ;;  %s1360_s15 = int_to_ptr.vmem [resolvable:$true] %s1359_s15 }
 0x2df   :  { %s1692_s16 = scalar_lea.vmem %s1360_s15, 512  ;;  %p1697_p9 = scmp.lt.s32.totalorder %s1360_s15, %s1360_s15 }
 0x2e0   :  { %p1693_p8 = scmp.ne.s32.totalorder %s1360_s15, %s1692_s16  ;;  %p1698_p10 = scmp.lt.s32.totalorder %s1692_s16, %s1692_s16 }
 0x2e2   :  { %p1699_p11 = por %p1698_p10, %p1697_p9 }
 0x2e4   :  { %v1643_v15 = vpop.eup %1642  ;;  %p1700_p12 = pnand %p1699_p11, %p1693_p8 }
 0x2e5   :  { %v1645_v34 = vpop.eup %1644  ;;  %v1062_v60 = vadd.f32 1.0, %v1643_v15  ;;  %v1198_v15 = vadd.s32 16, %v1884_v40 }
 0x2e6   :  { %v1647_v6 = vpop.eup %1646  ;;  %v1060_v63 = vadd.f32 1.0, %v1645_v34 }
 0x2e7   :  { %v1649_v0 = vpop.eup %1648  ;;  %v1063_v1 = vadd.f32 1.0, %v1647_v6  ;;  %v1433_v6 = vsel %vm1205_vm9, 1.0, %v1748_v28  ;;  %vm1207_vm10 = vcmp.eq.s32.totalorder %v1432_v11, %v1198_v15 }
 0x2e8   :  { %1650 = vrcp.f32 %v1060_v63  ;;  %v1061_v13 = vadd.f32 1.0, %v1649_v0  ;;  %1541 = vmatprep.mubr.msk.f32.mxu0 %vm138_vm0, %v1433_v6 }
 0x2e9   :  { %1652 = vrcp.f32 %v1062_v60 }
 0x2ea   :  { %1654 = vrcp.f32 %v1061_v13 }
 0x2eb   :  { %1656 = vrcp.f32 %v1063_v1  ;;  %v1435_v1 = vsel %vm1207_vm10, 1.0, %v1748_v28 }
 0x2ec   :  { %1544 = vmatprep.mubr.msk.f32.mxu1 %vm138_vm0, %v1435_v1 }
 0x2f2   :  { %v1651_v42 = vpop.eup %1650 }
 0x2f3   :  { %v1653_v4 = vpop.eup %1652  ;;  %v1099_v10 = vmul.f32 %v1651_v42, %v1088_v2  ;;  %v1127_v3 = vsub.f32 1.0, %v1651_v42 }
 0x2f4   :  { %v1655_v31 = vpop.eup %1654  ;;  %v1101_v49 = vmul.f32 %v1653_v4, %v1092_v17  ;;  %v1129_v53 = vsub.f32 1.0, %v1653_v4 }
 0x2f5   :  { %1107 = vrot.lane.b32.xlu0 %v1099_v10, %s1758_s7  ;;  %v1100_v16 = vmul.f32 %v1655_v31, %v1090_v48  ;;  %v1657_v36 = vpop.eup %1656  ;;  %v1128_v43 = vsub.f32 1.0, %v1655_v31  ;;  %v1197_v10 = vadd.s32 8, %v1884_v40 }
 0x2f6   :  { %v1102_v19 = vmul.f32 %v1657_v36, %v1094_v44  ;;  %v1130_v27 = vsub.f32 1.0, %v1657_v36 }
 0x2f7   :  { %1109 = vrot.lane.b32.xlu1 %v1100_v16, %s1758_s7  ;;  %vm1206_vm11 = vcmp.eq.s32.totalorder %v1432_v11, %v1197_v10 }
 0x2f9   :  { %1111 = vrot.lane.b32.xlu0 %v1101_v49, %s1758_s7 }
 0x2fb   :  { %1113 = vrot.lane.b32.xlu1 %v1102_v19, %s1758_s7 }
 0x2fd   :  { %1155 = vrot.lane.b32.xlu0 %v2238_v9, %s1756_s11 }
 0x2ff   :  { %1157 = vrot.lane.b32.xlu1 %v2235_v8, %s1756_s11 }
 0x367   :  { %v1108_v22 = vpop.permute.xlu0 %1107 }
 0x368   :  { %v1119_v25 = vadd.f32 %v1108_v22, %v1072_v32 }
 0x369   :  { %v1110_v23 = vpop.permute.xlu1 %1109 }
 0x36a   :  { %v1120_v9 = vadd.f32 %v1110_v23, %v1073_v45 }
 0x36b   :  { %v1112_v46 = vpop.permute.xlu0 %1111 }
 0x36c   :  { %v1121_v29 = vadd.f32 %v1112_v46, %v1074_v24 }
 0x36d   :  { %v1114_v41 = vpop.permute.xlu1 %1113 }
 0x36e   :  { %1658 = vtanh.f32 %v1121_v29  ;;  %v1122_v18 = vadd.f32 %v1114_v41, %v1075_v38 }
 0x36f   :  { %v1156_v14 = vpop.permute.xlu0 %1155 }
 0x370   :  { %1660 = vtanh.f32 %v1122_v18  ;;  %v1167_v37 = vmul.f32 %v1651_v42, %v1156_v14 }
 0x371   :  { %1662 = vtanh.f32 %v1119_v25  ;;  %v1158_v52 = vpop.permute.xlu1 %1157 }
 0x372   :  { %1664 = vtanh.f32 %v1120_v9  ;;  %v1168_v33 = vmul.f32 %v1655_v31, %v1158_v52  ;;  %v1199_v31 = vadd.s32 24, %v1884_v40  ;;  %v1434_v40 = vsel %vm1206_vm11, 1.0, %v1748_v28 }
 0x374   :  { %vm1208_vm12 = vcmp.eq.s32.totalorder %v1432_v11, %v1199_v31 }
 0x375   :  { %v1436_v23 = vsel %vm1208_vm12, 1.0, %v1748_v28 }
 0x378   :  { %v1659_v8 = vpop.eup %1658 }
 0x379   :  { %1139 = vrot.lane.b32.xlu0 %v1659_v8, %s1757_s13 }
 0x37a   :  { %v1661_v21 = vpop.eup %1660 }
 0x37b   :  { %1141 = vrot.lane.b32.xlu1 %v1661_v21, %s1757_s13  ;;  %v1663_v47 = vpop.eup %1662 }
 0x37c   :  { %v1665_v50 = vpop.eup %1664 }
 0x37d   :  { %1135 = vrot.lane.b32.xlu0 %v1663_v47, %s1757_s13 }
 0x37f   :  { %1137 = vrot.lane.b32.xlu1 %v1665_v50, %s1757_s13 }
 0x381   :  { %1159 = vrot.lane.b32.xlu0 %v2251_v62, %s1756_s11 }
 0x383   :  { %1161 = vrot.lane.b32.xlu1 %v2248_v39, %s1756_s11 }
 0x3eb   :  { %v1140_v56 = vpop.permute.xlu0 %1139 }
 0x3ec   :  { %v1149_v62 = vmul.f32 %v1140_v56, %v1129_v53 }
 0x3ed   :  { %v1142_v20 = vpop.permute.xlu1 %1141 }
 0x3ee   :  { %v1150_v39 = vmul.f32 %v1142_v20, %v1130_v27 }
 0x3ef   :  { %v1136_v26 = vpop.permute.xlu0 %1135 }
 0x3f0   :  { %v1147_v61 = vmul.f32 %v1136_v26, %v1127_v3 }
 0x3f1   :  { %v1138_v51 = vpop.permute.xlu1 %1137 }
 0x3f2   :  { %v1171_v30 = vadd.f32 %v1167_v37, %v1147_v61  ;;  %v1148_v5 = vmul.f32 %v1138_v51, %v1128_v43 }
 0x3f3   :  { %v1160_v55 = vpop.permute.xlu0 %1159 }
 0x3f4   :  { %v1172_v12 = vadd.f32 %v1168_v33, %v1148_v5  ;;  %v1169_v57 = vmul.f32 %v1653_v4, %v1160_v55  ;;  %v1217_v35 = vsub.f32 %v1171_v30, %v1156_v14 }
 0x3f5   :  { %v1162_v54 = vpop.permute.xlu1 %1161 }
 0x3f6   :  { %v1218_v58 = vsub.f32 %v1172_v12, %v1158_v52  ;;  %v1173_v7 = vadd.f32 %v1169_v57, %v1149_v62  ;;  %v1170_v59 = vmul.f32 %v1657_v36, %v1162_v54 }
 0x3f8   :  { %v1174_v34 = vadd.f32 %v1170_v59, %v1150_v39  ;;  %v1606_v60 = vpack.i.bf16 %v1218_v58, %v1217_v35  ;;  %v1219_v63 = vsub.f32 %v1173_v7, %v1160_v55 }
 0x3fa   :  { %v1220_v0 = vsub.f32 %v1174_v34, %v1162_v54  ;;  %1607 = vrot.lane.b32.xlu0 %v1606_v60, %s1757_s13 }
 0x3fc   :  { %v1611_v13 = vpack.i.bf16 %v1220_v0, %v1219_v63 }
 0x3fe   :  { %1179 = vrot.lane.b32.xlu0 %v1171_v30, %s1757_s13  ;;  %1612 = vrot.lane.b32.xlu1 %v1611_v13, %s1757_s13 }
 0x402   :  { %1183 = vrot.lane.b32.xlu0 %v1173_v7, %s1757_s13  ;;  %1181 = vrot.lane.b32.xlu1 %v1172_v12, %s1757_s13 }
 0x406   :  { %1185 = vrot.lane.b32.xlu1 %v1174_v34, %s1757_s13 }
 0x46c   :  { %v1608_v2 = vpop.permute.xlu0 %1607 }
 0x46d   :  { %v1610_v42 = vunpack.i.h.bf16 %v1608_v2  ;;  %v1609_v48 = vunpack.i.l.bf16 %v1608_v2 }
 0x46f   :  { %v1555_v4 = vpack.c.bf16 %v1610_v42, %v1609_v48 }
 0x470   :  { %v1180_v16 = vpop.permute.xlu0 %1179  ;;  %v1613_v36 = vpop.permute.xlu1 %1612 }
 0x471   :  { %1191 = vst.msk [vmem:[#allocation7] sm:$0xff] %vm138_vm0, %v1180_v16  ;;  %v1615_v17 = vunpack.i.h.bf16 %v1613_v36  ;;  %v1614_v49 = vunpack.i.l.bf16 %v1613_v36  ;;  %1556 = vmatprep.subr.bf16.mxu0 %v1555_v4  ;;  %1563 = vmatprep.subr.bf16.mxu1 %v1555_v4 }
 0x472   :  { %1558 = vmatpush3.bf16.msra.mxu0 %v1555_v4  ;;  %1565 = vmatpush3.bf16.msra.mxu1 %v1555_v4 }
 0x473   :  { %v1559_v44 = vpack.c.bf16 %v1615_v17, %v1614_v49 }
 0x474   :  { %v1184_v19 = vpop.permute.xlu0 %1183  ;;  %v1182_v22 = vpop.permute.xlu1 %1181 }
 0x475   :  { %1193 = vst.msk [vmem:[#allocation7 + $0x10] sm:$0xff] %vm138_vm0, %v1184_v19  ;;  %1192 = vst.msk [vmem:[#allocation7 + $0x8] sm:$0xff] %vm138_vm0, %v1182_v22  ;;  %1560 = vmatprep.subr.bf16.mxu0 %v1559_v44  ;;  %1564 = vmatprep.subr.bf16.mxu1 %v1559_v44 }
 0x476   :  { %1562 = vmatpush3.bf16.msra.mxu0 %v1559_v44  ;;  %1566 = vmatpush3.bf16.msra.mxu1 %v1559_v44 }
 0x478   :  { %v1186_v24 = vpop.permute.xlu1 %1185 }
 0x479   :  { %1194 = vst.msk [vmem:[#allocation7 + $0x18] sm:$0xff] %vm138_vm0, %v1186_v24  ;;  %1542 = vmatmul.mubr.msk.f32.vlgmr.msra.gmra.mrb[16].mxu0 %vm138_vm0, %v1434_v40  ;;  %1545 = vmatmul.mubr.msk.f32.vlgmr.msra.gmra.mrb[4].mxu1 %vm138_vm0, %v1436_v23 }
 0x47a   :  { %1703 = shalt.err (!%p1700_p12)
}
 0x47b   :  { %s1704_s21 = scalar_lea.hbm %s2374_s9, 512 }
 0x47c   :  { %p1705_p13 = scmp.ne.s32.totalorder %s2374_s9, %s1704_s21  ;;  %p1708_p0 = scmp.lt.u32.totalorder %s1704_s21, %s2374_s9 }
 0x47e   :  { %p1710_p1 = pnand %p1708_p0, %p1705_p13 }
 0x480   :  { %1713 = shalt.err (!%p1710_p1)
}
 0x481   :  { %1365 = dma.vmem_to_hbm [thread:$0]  %s1360_s15, 512, %s2374_s9, [#allocation8], %s1743_s19, %s1743_s19, %s1744_s20   ;;  %v1666_v32 = vld [vmem:[#allocation3 + $0x8] sm:$0xff]  ;;  %v1667_v29 = vld [vmem:[#allocation3 + $0x18] sm:$0xff]  ;;  %v1668_v18 = vld [vmem:[#allocation3] sm:$0xff] }
 0x482   :  { %s1760_s27 = smov [#allocation6]   ;;  %v1669_v8 = vld [vmem:[#allocation3 + $0x10] sm:$0xff] }
 0x483   :  { %s1347_s28 = sshll.u32 %s1760_s27, 4  ;;  %s1348_s28 = int_to_ptr.vmem [resolvable:$true] %s1347_s28 }
 0x484   :  { %s1714_s9 = scalar_lea.vmem %s1348_s28, 512  ;;  %p1719_p3 = scmp.lt.s32.totalorder %s1348_s28, %s1348_s28 }
 0x485   :  { %p1715_p2 = scmp.ne.s32.totalorder %s1348_s28, %s1714_s9  ;;  %p1720_p4 = scmp.lt.s32.totalorder %s1714_s9, %s1714_s9 }
 0x487   :  { %p1721_p5 = por %p1720_p4, %p1719_p3 }
 0x489   :  { %p1722_p6 = pnand %p1721_p5, %p1715_p2 }
 0x54c   :  { %v1543_v28 = vpop.f32.mrb[16].mxu0  ;;  %v1546_v46 = vpop.f32.mrb[4].mxu1 }
 0x54d   :  { %v1335_v38 = vadd.f32 %v1666_v32, %v1543_v28  ;;  %v1337_v41 = vadd.f32 %v1667_v29, %v1546_v46  ;;  %v1315_v45 = vpop.f32.mrb[17].mxu0  ;;  %v1325_v25 = vpop.f32.mrb[5].mxu1 }
 0x54e   :  { %v1334_v9 = vadd.f32 %v1668_v18, %v1315_v45  ;;  %v1336_v21 = vadd.f32 %v1669_v8, %v1325_v25 }
 0x54f   :  { %1339 = vst.msk [vmem:[#allocation6 + $0x8] sm:$0xff] %vm138_vm0, %v1335_v38  ;;  %1341 = vst.msk [vmem:[#allocation6 + $0x18] sm:$0xff] %vm138_vm0, %v1337_v41 }
 0x550   :  { %1338 = vst.msk [vmem:[#allocation6] sm:$0xff] %vm138_vm0, %v1334_v9  ;;  %1340 = vst.msk [vmem:[#allocation6 + $0x10] sm:$0xff] %vm138_vm0, %v1336_v21 }
 0x551   :  { %1725 = shalt.err (!%p1722_p6)
}
 0x552   :  { %s1726_s30 = scalar_lea.hbm %s2373_s8, 512 }
 0x553   :  { %p1727_p7 = scmp.ne.s32.totalorder %s2373_s8, %s1726_s30  ;;  %p1730_p8 = scmp.lt.u32.totalorder %s1726_s30, %s2373_s8 }
 0x555   :  { %p1732_p9 = pnand %p1730_p8, %p1727_p7 }
 0x557   :  { %1735 = shalt.err (!%p1732_p9)
}
 0x558   :  { %1353 = dma.vmem_to_hbm [thread:$0]  %s1348_s28, 512, %s2373_s8, [#allocation5], %s1743_s19, %s1743_s19, %s1744_s20  }
 0x559   :  { %1738 = dma.done.wait [#allocation5], 512  }
 0x55a   :  { %1739 = vsyncadd [#allocation5], 4294966784 }
 0x55b   :  { %1740 = dma.done.wait [#allocation8], 512  }
 0x55c   :  { %1741 = vsyncadd [#allocation8], 4294966784 }
 0x55d   :  { %1372 = vsyncpa [#allocation4], 1 }
 0x55e   :  { %1373 = vsyncpa [#allocation5], 1 }
 0x55f   :  { %1374 = vsyncpa [#allocation8], 1 }

</bundles_post_ra>
